<compile_context>
chip_gen: v6e
topology: v6e:2x2x1
jax: 0.10.0
libtpu: 0.0.40
codegen_flags: <defaults>
</compile_context>

<pallas_src>
import math

import jax
import jax.numpy as jnp
from jax.experimental import pallas as pl
from jax.experimental.pallas import tpu as pltpu

# ----- small synthetic config -----
B = 2            # batch
T = 8            # sequence length (decoder == encoder length here)
E = 128          # embedding width (multiple of 128 -> lane-dense blocks)
H = 4            # attention heads
D = E // H       # head dim
F = 4 * E        # FFD hidden width
N = B * T        # flattened rows per kernel invocation
EPS = 1e-5
SCALE = math.sqrt(D)      # module does  q @ k^T * sqrt(head_dim)  (folded into wq wrapper-side)
NEG_BIG = -1e30           # finite "masked" bias (avoids -inf - -inf NaN for fully-masked rows)


def decoder_layer_kernel(x_ref, enc_ref, trg_bias_ref, src_bias_ref,
                         g1_ref, g2_ref, g3_ref,
                         w_kqv1_ref, w_fc1_ref, b_fc1_ref,
                         w_k2_ref, w_qv2_ref, w_fc2_ref, b_fc2_ref,
                         w_ff1_ref, b_ff1_ref, w_ff2_ref, b_ff2_ref,
                         out_ref, merge_ref):
    x = x_ref[...]          # (N, E)  running residual (batch folded into rows)
    enc = enc_ref[...]      # (N, E)

    def layer_norm(v, g):
        mu = jnp.mean(v, axis=-1, keepdims=True)
        var = jnp.mean((v - mu) ** 2, axis=-1, keepdims=True)
        return (v - mu) * jax.lax.rsqrt(var + EPS) * g

    def attend(q_all, k_all, v_all, bias, w_fc, b_fc):
        # q_all/k_all/v_all: (N, E) lane-dense head-major projections (q pre-scaled by sqrt(D)).
        # bias: (N, N) additive mask (0 or -1e30, block-diagonal over the folded batch).
        # Per-head score math on 32-lane slices (tiny), merged output assembled head-major into
        # merge_ref so the final fc is ONE K=E matmul against the original (E, E) weight.
        for h in range(H):                                   # static unroll, H = 4
            sl = slice(h * D, (h + 1) * D)
            s = jnp.einsum("nd,md->nm", q_all[:, sl], k_all[:, sl],
                           preferred_element_type=jnp.float32) + bias
            s = s - jnp.max(s, axis=-1, keepdims=True)
            p = jnp.exp(s)
            den = jnp.sum(p, axis=-1, keepdims=True)
            r = pl.reciprocal(den, approx=True)
            r = r * (2.0 - den * r)                          # one Newton step -> ~f32 accuracy
            merge_ref[:, sl] = jnp.dot(p * r, v_all[:, sl],
                                       preferred_element_type=jnp.float32)
        return jnp.dot(merge_ref[...], w_fc,
                       preferred_element_type=jnp.float32) + b_fc

    # ---------- block 1: masked self attention (k = q = v = ln1(x)) ----------
    lx = layer_norm(x, g1_ref[...])
    kqv = jnp.dot(lx, w_kqv1_ref[...],                       # (N, 3E), cols = [k | q*sqrt(D) | v]
                  preferred_element_type=jnp.float32)
    attn1 = attend(kqv[:, E:2 * E], kqv[:, 0:E], kqv[:, 2 * E:3 * E],
                   trg_bias_ref[...], w_fc1_ref[...], b_fc1_ref[...])
    x = attn1 + x                                            # dp1 identity (eval)

    # ---------- block 2: cross attention (k = ln2(x), q = v = enc_out) ----------
    lx = layer_norm(x, g2_ref[...])
    k2 = jnp.dot(lx, w_k2_ref[...], preferred_element_type=jnp.float32)    # (N, E)
    qv = jnp.dot(enc, w_qv2_ref[...], preferred_element_type=jnp.float32)  # (N, 2E) = [q*sqrt(D) | v]
    attn2 = attend(qv[:, 0:E], k2, qv[:, E:2 * E],
                   src_bias_ref[...], w_fc2_ref[...], b_fc2_ref[...])
    x = attn2 + x                                            # dp2 identity (eval)

    # ---------- block 3: feed forward ----------
    lx = layer_norm(x, g3_ref[...])
    hdn = jnp.dot(lx, w_ff1_ref[...], preferred_element_type=jnp.float32) + b_ff1_ref[...]
    hdn = jnp.maximum(hdn, 0.0)                              # ReLU (FFD dropout identity in eval)
    mlp = jnp.dot(hdn, w_ff2_ref[...], preferred_element_type=jnp.float32) + b_ff2_ref[...]
    out_ref[...] = mlp + x                                   # dp3 identity (eval)


def decoder_layer(x, enc_out, trg_mask, src_mask, params):
    (g1, g2, g3,
     w_kqv1, w_fc1, b_fc1,
     w_k2, w_qv2, w_fc2, b_fc2,
     w_ff1, b_ff1, w_ff2, b_ff2) = params

    x2 = x.reshape(N, E)
    enc2 = enc_out.reshape(N, E)

    def block_diag_bias(mask):
        # (T, T) {0 = masked} -> (N, N) additive bias, block-diagonal across the folded batch:
        # cross-batch entries get -1e30 so the fold is numerically identical to per-batch attention.
        blk = jnp.where(mask != 0.0, 0.0, NEG_BIG).astype(jnp.float32)          # (T, T)
        same = jnp.eye(B, dtype=bool)                                            # (B, B)
        full = jnp.where(same[:, None, :, None], blk[None, :, None, :], NEG_BIG)  # (B, T, B, T)
        return full.reshape(N, N)

    trg_bias = block_diag_bias(trg_mask)
    src_bias = block_diag_bias(src_mask)

    args = (x2, enc2, trg_bias, src_bias,
            g1, g2, g3,
            w_kqv1, w_fc1, b_fc1,
            w_k2, w_qv2, w_fc2, b_fc2,
            w_ff1, b_ff1, w_ff2, b_ff2)

    vmem = pl.BlockSpec(memory_space=pltpu.MemorySpace.VMEM)   # whole-array VMEM residency
    out2 = pl.pallas_call(
        decoder_layer_kernel,
        out_shape=jax.ShapeDtypeStruct((N, E), jnp.float32),
        in_specs=[vmem] * len(args),
        out_specs=vmem,
        scratch_shapes=[pltpu.VMEM((N, E), jnp.float32)],       # head-merge assembly buffer
    )(*args)
    return out2.reshape(B, T, E)


# ---------- pure-JAX reference (mirrors the PyTorch DecoderLayer.forward) ----------
def reference(x, enc_out, trg_mask, src_mask, raw):
    (g1, g2, g3,
     wk1, wq1, wv1, wfc1, bfc1,
     wk2, wq2, wv2, wfc2, bfc2,
     w_ff1, b_ff1, w_ff2, b_ff2) = raw
    HI = jax.lax.Precision.HIGHEST

    def ln(v, g):
        mu = jnp.mean(v, axis=-1, keepdims=True)
        var = jnp.mean((v - mu) ** 2, axis=-1, keepdims=True)
        return (v - mu) / jnp.sqrt(var + EPS) * g

    def self_attention(k_in, q_in, v_in, wk, wq, wv, wfc, bfc, mask):
        k = jnp.dot(k_in, wk, precision=HI)
        q = jnp.dot(q_in, wq, precision=HI)
        v = jnp.dot(v_in, wv, precision=HI)

        def heads(t):
            return t.reshape(B, T, H, D).transpose(0, 2, 1, 3)

        k, q, v = heads(k), heads(q), heads(v)
        s = jnp.einsum("bhqd,bhkd->bhqk", q, k, precision=HI) * math.sqrt(D)
        s = jnp.where(mask[None, None] != 0.0, s, -jnp.inf)
        p = jax.nn.softmax(s, axis=-1)
        o = jnp.einsum("bhqk,bhkd->bhqd", p, v, precision=HI)
        o = o.transpose(0, 2, 1, 3).reshape(B, T, E)
        return jnp.dot(o, wfc, precision=HI) + bfc

    lx = ln(x, g1)
    x = self_attention(lx, lx, lx, wk1, wq1, wv1, wfc1, bfc1, trg_mask) + x
    lx = ln(x, g2)
    x = self_attention(lx, enc_out, enc_out, wk2, wq2, wv2, wfc2, bfc2, src_mask) + x
    lx = ln(x, g3)
    h = jnp.maximum(jnp.dot(lx, w_ff1, precision=HI) + b_ff1, 0.0)
    return jnp.dot(h, w_ff2, precision=HI) + b_ff2 + x


if __name__ == "__main__":
    key = jax.random.PRNGKey(0)
    keys = jax.random.split(key, 16)
    std = 0.02

    x = jax.random.normal(keys[0], (B, T, E), jnp.float32)
    enc_out = jax.random.normal(keys[1], (B, T, E), jnp.float32)
    trg_mask = jnp.tril(jnp.ones((T, T), jnp.float32))   # causal decoder mask
    src_mask = jnp.ones((T, T), jnp.float32)             # encoder fully visible

    g1 = jnp.ones((1, E), jnp.float32)
    g2 = jnp.ones((1, E), jnp.float32)
    g3 = jnp.ones((1, E), jnp.float32)
    wk1 = std * jax.random.normal(keys[2], (E, E), jnp.float32)
    wq1 = std * jax.random.normal(keys[3], (E, E), jnp.float32)
    wv1 = std * jax.random.normal(keys[4], (E, E), jnp.float32)
    wfc1 = std * jax.random.normal(keys[5], (E, E), jnp.float32)
    bfc1 = std * jax.random.normal(keys[6], (1, E), jnp.float32)
    wk2 = std * jax.random.normal(keys[7], (E, E), jnp.float32)
    wq2 = std * jax.random.normal(keys[8], (E, E), jnp.float32)
    wv2 = std * jax.random.normal(keys[9], (E, E), jnp.float32)
    wfc2 = std * jax.random.normal(keys[10], (E, E), jnp.float32)
    bfc2 = std * jax.random.normal(keys[11], (1, E), jnp.float32)
    w_ff1 = std * jax.random.normal(keys[12], (E, F), jnp.float32)
    b_ff1 = std * jax.random.normal(keys[13], (1, F), jnp.float32)
    w_ff2 = std * jax.random.normal(keys[14], (F, E), jnp.float32)
    b_ff2 = std * jax.random.normal(keys[15], (1, E), jnp.float32)

    raw = (g1, g2, g3,
           wk1, wq1, wv1, wfc1, bfc1,
           wk2, wq2, wv2, wfc2, bfc2,
           w_ff1, b_ff1, w_ff2, b_ff2)

    # One-time param prep (free layout plumbing, all lane-dense 2D weights):
    #   * attn1 k/q/v packed along columns into (E, 3E); attn2 q/v packed into (E, 2E)
    #   * sqrt(head_dim) score scale folded into the q columns
    #   * fc / FFD weights stay in their original 2D shapes (head-major merge order matches)
    w_kqv1 = jnp.concatenate([wk1, wq1 * SCALE, wv1], axis=1)   # (E, 3E) = [k | q*sqrt(D) | v]
    w_qv2 = jnp.concatenate([wq2 * SCALE, wv2], axis=1)         # (E, 2E) = [q*sqrt(D) | v]

    params = (g1, g2, g3,
              w_kqv1, wfc1, bfc1,
              wk2, w_qv2, wfc2, bfc2,
              w_ff1, b_ff1, w_ff2, b_ff2)

    out = decoder_layer(x, enc_out, trg_mask, src_mask, params)
    jax.block_until_ready(out)

    ref = reference(x, enc_out, trg_mask, src_mask, raw)
    assert out.shape == (B, T, E)
    err = jnp.max(jnp.abs(out - ref))
    assert jnp.allclose(out, ref, atol=1e-3, rtol=1e-3), f"mismatch vs reference, max err {err}"
    print("KERNEL_OK")
</pallas_src>

<mosaic_0001>
module attributes {stable_mosaic.version = 11 : i64} {
  func.func @decoder_layer_kernel(%arg0: memref<16x128xf32, #tpu.memory_space<vmem>>, %arg1: memref<16x128xf32, #tpu.memory_space<vmem>>, %arg2: memref<16x16xf32, #tpu.memory_space<vmem>>, %arg3: memref<16x16xf32, #tpu.memory_space<vmem>>, %arg4: memref<1x128xf32, #tpu.memory_space<vmem>>, %arg5: memref<1x128xf32, #tpu.memory_space<vmem>>, %arg6: memref<1x128xf32, #tpu.memory_space<vmem>>, %arg7: memref<128x384xf32, #tpu.memory_space<vmem>>, %arg8: memref<128x128xf32, #tpu.memory_space<vmem>>, %arg9: memref<1x128xf32, #tpu.memory_space<vmem>>, %arg10: memref<128x128xf32, #tpu.memory_space<vmem>>, %arg11: memref<128x256xf32, #tpu.memory_space<vmem>>, %arg12: memref<128x128xf32, #tpu.memory_space<vmem>>, %arg13: memref<1x128xf32, #tpu.memory_space<vmem>>, %arg14: memref<128x512xf32, #tpu.memory_space<vmem>>, %arg15: memref<1x512xf32, #tpu.memory_space<vmem>>, %arg16: memref<512x128xf32, #tpu.memory_space<vmem>>, %arg17: memref<1x128xf32, #tpu.memory_space<vmem>>, %arg18: memref<16x128xf32, #tpu.memory_space<vmem>>, %arg19: memref<16x128xf32, #tpu.memory_space<vmem>>) attributes {dimension_semantics = [], scalar_prefetch = 0 : i64, scratch_operands = 1 : i64, tpu.core_type = #tpu.core_type<tc>} {
    %c0 = arith.constant 0 : index
    %c0_0 = arith.constant 0 : index
    %0 = vector.load %arg0[%c0, %c0_0] : memref<16x128xf32, #tpu.memory_space<vmem>>, vector<16x128xf32>
    %c0_1 = arith.constant 0 : index
    %c0_2 = arith.constant 0 : index
    %1 = vector.load %arg1[%c0_1, %c0_2] : memref<16x128xf32, #tpu.memory_space<vmem>>, vector<16x128xf32>
    %c0_3 = arith.constant 0 : index
    %c0_4 = arith.constant 0 : index
    %2 = vector.load %arg4[%c0_3, %c0_4] : memref<1x128xf32, #tpu.memory_space<vmem>>, vector<1x128xf32>
    %cst = arith.constant dense<0.000000e+00> : vector<16xf32>
    %3 = vector.multi_reduction <add>, %0, %cst [1] : vector<16x128xf32> to vector<16xf32>
    %4 = vector.shape_cast %3 : vector<16xf32> to vector<16x1xf32>
    %cst_5 = arith.constant 1.280000e+02 : f32
    %5 = vector.broadcast %cst_5 : f32 to vector<16x1xf32>
    %6 = arith.divf %4, %5 : vector<16x1xf32>
    %7 = vector.broadcast %6 : vector<16x1xf32> to vector<16x128xf32>
    %8 = arith.subf %0, %7 : vector<16x128xf32>
    %9 = arith.mulf %8, %8 : vector<16x128xf32>
    %cst_6 = arith.constant dense<0.000000e+00> : vector<16xf32>
    %10 = vector.multi_reduction <add>, %9, %cst_6 [1] : vector<16x128xf32> to vector<16xf32>
    %11 = vector.shape_cast %10 : vector<16xf32> to vector<16x1xf32>
    %cst_7 = arith.constant 1.280000e+02 : f32
    %12 = vector.broadcast %cst_7 : f32 to vector<16x1xf32>
    %13 = arith.divf %11, %12 : vector<16x1xf32>
    %14 = vector.broadcast %6 : vector<16x1xf32> to vector<16x128xf32>
    %15 = arith.subf %0, %14 : vector<16x128xf32>
    %cst_8 = arith.constant 9.99999974E-6 : f32
    %16 = vector.broadcast %cst_8 : f32 to vector<16x1xf32>
    %17 = arith.addf %13, %16 : vector<16x1xf32>
    %18 = math.rsqrt %17 : vector<16x1xf32>
    %19 = vector.broadcast %18 : vector<16x1xf32> to vector<16x128xf32>
    %20 = arith.mulf %15, %19 : vector<16x128xf32>
    %21 = vector.broadcast %2 : vector<1x128xf32> to vector<16x128xf32>
    %22 = arith.mulf %20, %21 : vector<16x128xf32>
    %c0_9 = arith.constant 0 : index
    %c0_10 = arith.constant 0 : index
    %23 = vector.load %arg7[%c0_9, %c0_10] : memref<128x384xf32, #tpu.memory_space<vmem>>, vector<128x384xf32>
    %cst_11 = arith.constant dense<0.000000e+00> : vector<16x384xf32>
    %24 = tpu.matmul %22, %23, %cst_11 {dimension_numbers = #tpu.dot_dimension_numbers<[1], [0], [0], [1], [0, 0, 1, 1], [], []>} : vector<16x128xf32>, vector<128x384xf32>, vector<16x384xf32> -> vector<16x384xf32>
    %25 = vector.extract_strided_slice %24 {offsets = [0, 128], sizes = [16, 128], strides = [1, 1]} : vector<16x384xf32> to vector<16x128xf32>
    %26 = vector.extract_strided_slice %24 {offsets = [0, 0], sizes = [16, 128], strides = [1, 1]} : vector<16x384xf32> to vector<16x128xf32>
    %27 = vector.extract_strided_slice %24 {offsets = [0, 256], sizes = [16, 128], strides = [1, 1]} : vector<16x384xf32> to vector<16x128xf32>
    %c0_12 = arith.constant 0 : index
    %c0_13 = arith.constant 0 : index
    %28 = vector.load %arg2[%c0_12, %c0_13] : memref<16x16xf32, #tpu.memory_space<vmem>>, vector<16x16xf32>
    %c0_14 = arith.constant 0 : index
    %c0_15 = arith.constant 0 : index
    %29 = vector.load %arg8[%c0_14, %c0_15] : memref<128x128xf32, #tpu.memory_space<vmem>>, vector<128x128xf32>
    %c0_16 = arith.constant 0 : index
    %c0_17 = arith.constant 0 : index
    %30 = vector.load %arg9[%c0_16, %c0_17] : memref<1x128xf32, #tpu.memory_space<vmem>>, vector<1x128xf32>
    %31 = vector.extract_strided_slice %25 {offsets = [0, 0], sizes = [16, 32], strides = [1, 1]} : vector<16x128xf32> to vector<16x32xf32>
    %32 = vector.extract_strided_slice %26 {offsets = [0, 0], sizes = [16, 32], strides = [1, 1]} : vector<16x128xf32> to vector<16x32xf32>
    "tpu.trace_start"() <{level = 10 : i32, message = "nd,md->nm"}> : () -> ()
    %cst_18 = arith.constant dense<0.000000e+00> : vector<16x16xf32>
    %33 = tpu.matmul %31, %32, %cst_18 {dimension_numbers = #tpu.dot_dimension_numbers<[1], [1], [0], [0], [0, 0, 1, 0], [], []>} : vector<16x32xf32>, vector<16x32xf32>, vector<16x16xf32> -> vector<16x16xf32>
    "tpu.trace_stop"() : () -> ()
    %34 = arith.addf %33, %28 : vector<16x16xf32>
    %cst_19 = arith.constant dense<0xFF800000> : vector<16xf32>
    %35 = vector.multi_reduction <maximumf>, %34, %cst_19 [1] : vector<16x16xf32> to vector<16xf32>
    %36 = vector.shape_cast %35 : vector<16xf32> to vector<16x1xf32>
    %37 = vector.broadcast %36 : vector<16x1xf32> to vector<16x16xf32>
    %38 = arith.subf %34, %37 : vector<16x16xf32>
    %39 = math.exp %38 : vector<16x16xf32>
    %cst_20 = arith.constant dense<0.000000e+00> : vector<16xf32>
    %40 = vector.multi_reduction <add>, %39, %cst_20 [1] : vector<16x16xf32> to vector<16xf32>
    %41 = vector.shape_cast %40 : vector<16xf32> to vector<16x1xf32>
    %42 = tpu.reciprocal %41 {approx = true} : vector<16x1xf32> -> vector<16x1xf32>
    %43 = arith.mulf %41, %42 : vector<16x1xf32>
    %cst_21 = arith.constant 2.000000e+00 : f32
    %44 = vector.broadcast %cst_21 : f32 to vector<16x1xf32>
    %45 = arith.subf %44, %43 : vector<16x1xf32>
    %46 = arith.mulf %42, %45 : vector<16x1xf32>
    %47 = vector.broadcast %46 : vector<16x1xf32> to vector<16x16xf32>
    %48 = arith.mulf %39, %47 : vector<16x16xf32>
    %49 = vector.extract_strided_slice %27 {offsets = [0, 0], sizes = [16, 32], strides = [1, 1]} : vector<16x128xf32> to vector<16x32xf32>
    %cst_22 = arith.constant dense<0.000000e+00> : vector<16x32xf32>
    %50 = tpu.matmul %48, %49, %cst_22 {dimension_numbers = #tpu.dot_dimension_numbers<[1], [0], [0], [1], [0, 0, 1, 1], [], []>} : vector<16x16xf32>, vector<16x32xf32>, vector<16x32xf32> -> vector<16x32xf32>
    %c0_23 = arith.constant 0 : index
    %c0_24 = arith.constant 0 : index
    %51 = vector.load %arg19[%c0_23, %c0_24] : memref<16x128xf32, #tpu.memory_space<vmem>>, vector<16x32xf32>
    tpu.vector_store %arg19[%c0_23, %c0_24], %50 {strides = array<i32>} : memref<16x128xf32, #tpu.memory_space<vmem>>, vector<16x32xf32>,
    %52 = vector.extract_strided_slice %25 {offsets = [0, 32], sizes = [16, 32], strides = [1, 1]} : vector<16x128xf32> to vector<16x32xf32>
    %53 = vector.extract_strided_slice %26 {offsets = [0, 32], sizes = [16, 32], strides = [1, 1]} : vector<16x128xf32> to vector<16x32xf32>
    "tpu.trace_start"() <{level = 10 : i32, message = "nd,md->nm"}> : () -> ()
    %cst_25 = arith.constant dense<0.000000e+00> : vector<16x16xf32>
    %54 = tpu.matmul %52, %53, %cst_25 {dimension_numbers = #tpu.dot_dimension_numbers<[1], [1], [0], [0], [0, 0, 1, 0], [], []>} : vector<16x32xf32>, vector<16x32xf32>, vector<16x16xf32> -> vector<16x16xf32>
    "tpu.trace_stop"() : () -> ()
    %55 = arith.addf %54, %28 : vector<16x16xf32>
    %cst_26 = arith.constant dense<0xFF800000> : vector<16xf32>
    %56 = vector.multi_reduction <maximumf>, %55, %cst_26 [1] : vector<16x16xf32> to vector<16xf32>
    %57 = vector.shape_cast %56 : vector<16xf32> to vector<16x1xf32>
    %58 = vector.broadcast %57 : vector<16x1xf32> to vector<16x16xf32>
    %59 = arith.subf %55, %58 : vector<16x16xf32>
    %60 = math.exp %59 : vector<16x16xf32>
    %cst_27 = arith.constant dense<0.000000e+00> : vector<16xf32>
    %61 = vector.multi_reduction <add>, %60, %cst_27 [1] : vector<16x16xf32> to vector<16xf32>
    %62 = vector.shape_cast %61 : vector<16xf32> to vector<16x1xf32>
    %63 = tpu.reciprocal %62 {approx = true} : vector<16x1xf32> -> vector<16x1xf32>
    %64 = arith.mulf %62, %63 : vector<16x1xf32>
    %cst_28 = arith.constant 2.000000e+00 : f32
    %65 = vector.broadcast %cst_28 : f32 to vector<16x1xf32>
    %66 = arith.subf %65, %64 : vector<16x1xf32>
    %67 = arith.mulf %63, %66 : vector<16x1xf32>
    %68 = vector.broadcast %67 : vector<16x1xf32> to vector<16x16xf32>
    %69 = arith.mulf %60, %68 : vector<16x16xf32>
    %70 = vector.extract_strided_slice %27 {offsets = [0, 32], sizes = [16, 32], strides = [1, 1]} : vector<16x128xf32> to vector<16x32xf32>
    %cst_29 = arith.constant dense<0.000000e+00> : vector<16x32xf32>
    %71 = tpu.matmul %69, %70, %cst_29 {dimension_numbers = #tpu.dot_dimension_numbers<[1], [0], [0], [1], [0, 0, 1, 1], [], []>} : vector<16x16xf32>, vector<16x32xf32>, vector<16x32xf32> -> vector<16x32xf32>
    %c0_30 = arith.constant 0 : index
    %c32 = arith.constant 32 : index
    %72 = vector.load %arg19[%c0_30, %c32] : memref<16x128xf32, #tpu.memory_space<vmem>>, vector<16x32xf32>
    tpu.vector_store %arg19[%c0_30, %c32], %71 {strides = array<i32>} : memref<16x128xf32, #tpu.memory_space<vmem>>, vector<16x32xf32>,
    %73 = vector.extract_strided_slice %25 {offsets = [0, 64], sizes = [16, 32], strides = [1, 1]} : vector<16x128xf32> to vector<16x32xf32>
    %74 = vector.extract_strided_slice %26 {offsets = [0, 64], sizes = [16, 32], strides = [1, 1]} : vector<16x128xf32> to vector<16x32xf32>
    "tpu.trace_start"() <{level = 10 : i32, message = "nd,md->nm"}> : () -> ()
    %cst_31 = arith.constant dense<0.000000e+00> : vector<16x16xf32>
    %75 = tpu.matmul %73, %74, %cst_31 {dimension_numbers = #tpu.dot_dimension_numbers<[1], [1], [0], [0], [0, 0, 1, 0], [], []>} : vector<16x32xf32>, vector<16x32xf32>, vector<16x16xf32> -> vector<16x16xf32>
    "tpu.trace_stop"() : () -> ()
    %76 = arith.addf %75, %28 : vector<16x16xf32>
    %cst_32 = arith.constant dense<0xFF800000> : vector<16xf32>
    %77 = vector.multi_reduction <maximumf>, %76, %cst_32 [1] : vector<16x16xf32> to vector<16xf32>
    %78 = vector.shape_cast %77 : vector<16xf32> to vector<16x1xf32>
    %79 = vector.broadcast %78 : vector<16x1xf32> to vector<16x16xf32>
    %80 = arith.subf %76, %79 : vector<16x16xf32>
    %81 = math.exp %80 : vector<16x16xf32>
    %cst_33 = arith.constant dense<0.000000e+00> : vector<16xf32>
    %82 = vector.multi_reduction <add>, %81, %cst_33 [1] : vector<16x16xf32> to vector<16xf32>
    %83 = vector.shape_cast %82 : vector<16xf32> to vector<16x1xf32>
    %84 = tpu.reciprocal %83 {approx = true} : vector<16x1xf32> -> vector<16x1xf32>
    %85 = arith.mulf %83, %84 : vector<16x1xf32>
    %cst_34 = arith.constant 2.000000e+00 : f32
    %86 = vector.broadcast %cst_34 : f32 to vector<16x1xf32>
    %87 = arith.subf %86, %85 : vector<16x1xf32>
    %88 = arith.mulf %84, %87 : vector<16x1xf32>
    %89 = vector.broadcast %88 : vector<16x1xf32> to vector<16x16xf32>
    %90 = arith.mulf %81, %89 : vector<16x16xf32>
    %91 = vector.extract_strided_slice %27 {offsets = [0, 64], sizes = [16, 32], strides = [1, 1]} : vector<16x128xf32> to vector<16x32xf32>
    %cst_35 = arith.constant dense<0.000000e+00> : vector<16x32xf32>
    %92 = tpu.matmul %90, %91, %cst_35 {dimension_numbers = #tpu.dot_dimension_numbers<[1], [0], [0], [1], [0, 0, 1, 1], [], []>} : vector<16x16xf32>, vector<16x32xf32>, vector<16x32xf32> -> vector<16x32xf32>
    %c0_36 = arith.constant 0 : index
    %c64 = arith.constant 64 : index
    %93 = vector.load %arg19[%c0_36, %c64] : memref<16x128xf32, #tpu.memory_space<vmem>>, vector<16x32xf32>
    tpu.vector_store %arg19[%c0_36, %c64], %92 {strides = array<i32>} : memref<16x128xf32, #tpu.memory_space<vmem>>, vector<16x32xf32>,
    %94 = vector.extract_strided_slice %25 {offsets = [0, 96], sizes = [16, 32], strides = [1, 1]} : vector<16x128xf32> to vector<16x32xf32>
    %95 = vector.extract_strided_slice %26 {offsets = [0, 96], sizes = [16, 32], strides = [1, 1]} : vector<16x128xf32> to vector<16x32xf32>
    "tpu.trace_start"() <{level = 10 : i32, message = "nd,md->nm"}> : () -> ()
    %cst_37 = arith.constant dense<0.000000e+00> : vector<16x16xf32>
    %96 = tpu.matmul %94, %95, %cst_37 {dimension_numbers = #tpu.dot_dimension_numbers<[1], [1], [0], [0], [0, 0, 1, 0], [], []>} : vector<16x32xf32>, vector<16x32xf32>, vector<16x16xf32> -> vector<16x16xf32>
    "tpu.trace_stop"() : () -> ()
    %97 = arith.addf %96, %28 : vector<16x16xf32>
    %cst_38 = arith.constant dense<0xFF800000> : vector<16xf32>
    %98 = vector.multi_reduction <maximumf>, %97, %cst_38 [1] : vector<16x16xf32> to vector<16xf32>
    %99 = vector.shape_cast %98 : vector<16xf32> to vector<16x1xf32>
    %100 = vector.broadcast %99 : vector<16x1xf32> to vector<16x16xf32>
    %101 = arith.subf %97, %100 : vector<16x16xf32>
    %102 = math.exp %101 : vector<16x16xf32>
    %cst_39 = arith.constant dense<0.000000e+00> : vector<16xf32>
    %103 = vector.multi_reduction <add>, %102, %cst_39 [1] : vector<16x16xf32> to vector<16xf32>
    %104 = vector.shape_cast %103 : vector<16xf32> to vector<16x1xf32>
    %105 = tpu.reciprocal %104 {approx = true} : vector<16x1xf32> -> vector<16x1xf32>
    %106 = arith.mulf %104, %105 : vector<16x1xf32>
    %cst_40 = arith.constant 2.000000e+00 : f32
    %107 = vector.broadcast %cst_40 : f32 to vector<16x1xf32>
    %108 = arith.subf %107, %106 : vector<16x1xf32>
    %109 = arith.mulf %105, %108 : vector<16x1xf32>
    %110 = vector.broadcast %109 : vector<16x1xf32> to vector<16x16xf32>
    %111 = arith.mulf %102, %110 : vector<16x16xf32>
    %112 = vector.extract_strided_slice %27 {offsets = [0, 96], sizes = [16, 32], strides = [1, 1]} : vector<16x128xf32> to vector<16x32xf32>
    %cst_41 = arith.constant dense<0.000000e+00> : vector<16x32xf32>
    %113 = tpu.matmul %111, %112, %cst_41 {dimension_numbers = #tpu.dot_dimension_numbers<[1], [0], [0], [1], [0, 0, 1, 1], [], []>} : vector<16x16xf32>, vector<16x32xf32>, vector<16x32xf32> -> vector<16x32xf32>
    %c0_42 = arith.constant 0 : index
    %c96 = arith.constant 96 : index
    %114 = vector.load %arg19[%c0_42, %c96] : memref<16x128xf32, #tpu.memory_space<vmem>>, vector<16x32xf32>
    tpu.vector_store %arg19[%c0_42, %c96], %113 {strides = array<i32>} : memref<16x128xf32, #tpu.memory_space<vmem>>, vector<16x32xf32>,
    %c0_43 = arith.constant 0 : index
    %c0_44 = arith.constant 0 : index
    %115 = vector.load %arg19[%c0_43, %c0_44] : memref<16x128xf32, #tpu.memory_space<vmem>>, vector<16x128xf32>
    %cst_45 = arith.constant dense<0.000000e+00> : vector<16x128xf32>
    %116 = tpu.matmul %115, %29, %cst_45 {dimension_numbers = #tpu.dot_dimension_numbers<[1], [0], [0], [1], [0, 0, 1, 1], [], []>} : vector<16x128xf32>, vector<128x128xf32>, vector<16x128xf32> -> vector<16x128xf32>
    %117 = vector.broadcast %30 : vector<1x128xf32> to vector<16x128xf32>
    %118 = arith.addf %116, %117 : vector<16x128xf32>
    %119 = arith.addf %118, %0 : vector<16x128xf32>
    %c0_46 = arith.constant 0 : index
    %c0_47 = arith.constant 0 : index
    %120 = vector.load %arg5[%c0_46, %c0_47] : memref<1x128xf32, #tpu.memory_space<vmem>>, vector<1x128xf32>
    %cst_48 = arith.constant dense<0.000000e+00> : vector<16xf32>
    %121 = vector.multi_reduction <add>, %119, %cst_48 [1] : vector<16x128xf32> to vector<16xf32>
    %122 = vector.shape_cast %121 : vector<16xf32> to vector<16x1xf32>
    %cst_49 = arith.constant 1.280000e+02 : f32
    %123 = vector.broadcast %cst_49 : f32 to vector<16x1xf32>
    %124 = arith.divf %122, %123 : vector<16x1xf32>
    %125 = vector.broadcast %124 : vector<16x1xf32> to vector<16x128xf32>
    %126 = arith.subf %119, %125 : vector<16x128xf32>
    %127 = arith.mulf %126, %126 : vector<16x128xf32>
    %cst_50 = arith.constant dense<0.000000e+00> : vector<16xf32>
    %128 = vector.multi_reduction <add>, %127, %cst_50 [1] : vector<16x128xf32> to vector<16xf32>
    %129 = vector.shape_cast %128 : vector<16xf32> to vector<16x1xf32>
    %cst_51 = arith.constant 1.280000e+02 : f32
    %130 = vector.broadcast %cst_51 : f32 to vector<16x1xf32>
    %131 = arith.divf %129, %130 : vector<16x1xf32>
    %132 = vector.broadcast %124 : vector<16x1xf32> to vector<16x128xf32>
    %133 = arith.subf %119, %132 : vector<16x128xf32>
    %cst_52 = arith.constant 9.99999974E-6 : f32
    %134 = vector.broadcast %cst_52 : f32 to vector<16x1xf32>
    %135 = arith.addf %131, %134 : vector<16x1xf32>
    %136 = math.rsqrt %135 : vector<16x1xf32>
    %137 = vector.broadcast %136 : vector<16x1xf32> to vector<16x128xf32>
    %138 = arith.mulf %133, %137 : vector<16x128xf32>
    %139 = vector.broadcast %120 : vector<1x128xf32> to vector<16x128xf32>
    %140 = arith.mulf %138, %139 : vector<16x128xf32>
    %c0_53 = arith.constant 0 : index
    %c0_54 = arith.constant 0 : index
    %141 = vector.load %arg10[%c0_53, %c0_54] : memref<128x128xf32, #tpu.memory_space<vmem>>, vector<128x128xf32>
    %cst_55 = arith.constant dense<0.000000e+00> : vector<16x128xf32>
    %142 = tpu.matmul %140, %141, %cst_55 {dimension_numbers = #tpu.dot_dimension_numbers<[1], [0], [0], [1], [0, 0, 1, 1], [], []>} : vector<16x128xf32>, vector<128x128xf32>, vector<16x128xf32> -> vector<16x128xf32>
    %c0_56 = arith.constant 0 : index
    %c0_57 = arith.constant 0 : index
    %143 = vector.load %arg11[%c0_56, %c0_57] : memref<128x256xf32, #tpu.memory_space<vmem>>, vector<128x256xf32>
    %cst_58 = arith.constant dense<0.000000e+00> : vector<16x256xf32>
    %144 = tpu.matmul %1, %143, %cst_58 {dimension_numbers = #tpu.dot_dimension_numbers<[1], [0], [0], [1], [0, 0, 1, 1], [], []>} : vector<16x128xf32>, vector<128x256xf32>, vector<16x256xf32> -> vector<16x256xf32>
    %145 = vector.extract_strided_slice %144 {offsets = [0, 0], sizes = [16, 128], strides = [1, 1]} : vector<16x256xf32> to vector<16x128xf32>
    %146 = vector.extract_strided_slice %144 {offsets = [0, 128], sizes = [16, 128], strides = [1, 1]} : vector<16x256xf32> to vector<16x128xf32>
    %c0_59 = arith.constant 0 : index
    %c0_60 = arith.constant 0 : index
    %147 = vector.load %arg3[%c0_59, %c0_60] : memref<16x16xf32, #tpu.memory_space<vmem>>, vector<16x16xf32>
    %c0_61 = arith.constant 0 : index
    %c0_62 = arith.constant 0 : index
    %148 = vector.load %arg12[%c0_61, %c0_62] : memref<128x128xf32, #tpu.memory_space<vmem>>, vector<128x128xf32>
    %c0_63 = arith.constant 0 : index
    %c0_64 = arith.constant 0 : index
    %149 = vector.load %arg13[%c0_63, %c0_64] : memref<1x128xf32, #tpu.memory_space<vmem>>, vector<1x128xf32>
    %150 = vector.extract_strided_slice %145 {offsets = [0, 0], sizes = [16, 32], strides = [1, 1]} : vector<16x128xf32> to vector<16x32xf32>
    %151 = vector.extract_strided_slice %142 {offsets = [0, 0], sizes = [16, 32], strides = [1, 1]} : vector<16x128xf32> to vector<16x32xf32>
    "tpu.trace_start"() <{level = 10 : i32, message = "nd,md->nm"}> : () -> ()
    %cst_65 = arith.constant dense<0.000000e+00> : vector<16x16xf32>
    %152 = tpu.matmul %150, %151, %cst_65 {dimension_numbers = #tpu.dot_dimension_numbers<[1], [1], [0], [0], [0, 0, 1, 0], [], []>} : vector<16x32xf32>, vector<16x32xf32>, vector<16x16xf32> -> vector<16x16xf32>
    "tpu.trace_stop"() : () -> ()
    %153 = arith.addf %152, %147 : vector<16x16xf32>
    %cst_66 = arith.constant dense<0xFF800000> : vector<16xf32>
    %154 = vector.multi_reduction <maximumf>, %153, %cst_66 [1] : vector<16x16xf32> to vector<16xf32>
    %155 = vector.shape_cast %154 : vector<16xf32> to vector<16x1xf32>
    %156 = vector.broadcast %155 : vector<16x1xf32> to vector<16x16xf32>
    %157 = arith.subf %153, %156 : vector<16x16xf32>
    %158 = math.exp %157 : vector<16x16xf32>
    %cst_67 = arith.constant dense<0.000000e+00> : vector<16xf32>
    %159 = vector.multi_reduction <add>, %158, %cst_67 [1] : vector<16x16xf32> to vector<16xf32>
    %160 = vector.shape_cast %159 : vector<16xf32> to vector<16x1xf32>
    %161 = tpu.reciprocal %160 {approx = true} : vector<16x1xf32> -> vector<16x1xf32>
    %162 = arith.mulf %160, %161 : vector<16x1xf32>
    %cst_68 = arith.constant 2.000000e+00 : f32
    %163 = vector.broadcast %cst_68 : f32 to vector<16x1xf32>
    %164 = arith.subf %163, %162 : vector<16x1xf32>
    %165 = arith.mulf %161, %164 : vector<16x1xf32>
    %166 = vector.broadcast %165 : vector<16x1xf32> to vector<16x16xf32>
    %167 = arith.mulf %158, %166 : vector<16x16xf32>
    %168 = vector.extract_strided_slice %146 {offsets = [0, 0], sizes = [16, 32], strides = [1, 1]} : vector<16x128xf32> to vector<16x32xf32>
    %cst_69 = arith.constant dense<0.000000e+00> : vector<16x32xf32>
    %169 = tpu.matmul %167, %168, %cst_69 {dimension_numbers = #tpu.dot_dimension_numbers<[1], [0], [0], [1], [0, 0, 1, 1], [], []>} : vector<16x16xf32>, vector<16x32xf32>, vector<16x32xf32> -> vector<16x32xf32>
    %c0_70 = arith.constant 0 : index
    %c0_71 = arith.constant 0 : index
    %170 = vector.load %arg19[%c0_70, %c0_71] : memref<16x128xf32, #tpu.memory_space<vmem>>, vector<16x32xf32>
    tpu.vector_store %arg19[%c0_70, %c0_71], %169 {strides = array<i32>} : memref<16x128xf32, #tpu.memory_space<vmem>>, vector<16x32xf32>,
    %171 = vector.extract_strided_slice %145 {offsets = [0, 32], sizes = [16, 32], strides = [1, 1]} : vector<16x128xf32> to vector<16x32xf32>
    %172 = vector.extract_strided_slice %142 {offsets = [0, 32], sizes = [16, 32], strides = [1, 1]} : vector<16x128xf32> to vector<16x32xf32>
    "tpu.trace_start"() <{level = 10 : i32, message = "nd,md->nm"}> : () -> ()
    %cst_72 = arith.constant dense<0.000000e+00> : vector<16x16xf32>
    %173 = tpu.matmul %171, %172, %cst_72 {dimension_numbers = #tpu.dot_dimension_numbers<[1], [1], [0], [0], [0, 0, 1, 0], [], []>} : vector<16x32xf32>, vector<16x32xf32>, vector<16x16xf32> -> vector<16x16xf32>
    "tpu.trace_stop"() : () -> ()
    %174 = arith.addf %173, %147 : vector<16x16xf32>
    %cst_73 = arith.constant dense<0xFF800000> : vector<16xf32>
    %175 = vector.multi_reduction <maximumf>, %174, %cst_73 [1] : vector<16x16xf32> to vector<16xf32>
    %176 = vector.shape_cast %175 : vector<16xf32> to vector<16x1xf32>
    %177 = vector.broadcast %176 : vector<16x1xf32> to vector<16x16xf32>
    %178 = arith.subf %174, %177 : vector<16x16xf32>
    %179 = math.exp %178 : vector<16x16xf32>
    %cst_74 = arith.constant dense<0.000000e+00> : vector<16xf32>
    %180 = vector.multi_reduction <add>, %179, %cst_74 [1] : vector<16x16xf32> to vector<16xf32>
    %181 = vector.shape_cast %180 : vector<16xf32> to vector<16x1xf32>
    %182 = tpu.reciprocal %181 {approx = true} : vector<16x1xf32> -> vector<16x1xf32>
    %183 = arith.mulf %181, %182 : vector<16x1xf32>
    %cst_75 = arith.constant 2.000000e+00 : f32
    %184 = vector.broadcast %cst_75 : f32 to vector<16x1xf32>
    %185 = arith.subf %184, %183 : vector<16x1xf32>
    %186 = arith.mulf %182, %185 : vector<16x1xf32>
    %187 = vector.broadcast %186 : vector<16x1xf32> to vector<16x16xf32>
    %188 = arith.mulf %179, %187 : vector<16x16xf32>
    %189 = vector.extract_strided_slice %146 {offsets = [0, 32], sizes = [16, 32], strides = [1, 1]} : vector<16x128xf32> to vector<16x32xf32>
    %cst_76 = arith.constant dense<0.000000e+00> : vector<16x32xf32>
    %190 = tpu.matmul %188, %189, %cst_76 {dimension_numbers = #tpu.dot_dimension_numbers<[1], [0], [0], [1], [0, 0, 1, 1], [], []>} : vector<16x16xf32>, vector<16x32xf32>, vector<16x32xf32> -> vector<16x32xf32>
    %c0_77 = arith.constant 0 : index
    %c32_78 = arith.constant 32 : index
    %191 = vector.load %arg19[%c0_77, %c32_78] : memref<16x128xf32, #tpu.memory_space<vmem>>, vector<16x32xf32>
    tpu.vector_store %arg19[%c0_77, %c32_78], %190 {strides = array<i32>} : memref<16x128xf32, #tpu.memory_space<vmem>>, vector<16x32xf32>,
    %192 = vector.extract_strided_slice %145 {offsets = [0, 64], sizes = [16, 32], strides = [1, 1]} : vector<16x128xf32> to vector<16x32xf32>
    %193 = vector.extract_strided_slice %142 {offsets = [0, 64], sizes = [16, 32], strides = [1, 1]} : vector<16x128xf32> to vector<16x32xf32>
    "tpu.trace_start"() <{level = 10 : i32, message = "nd,md->nm"}> : () -> ()
    %cst_79 = arith.constant dense<0.000000e+00> : vector<16x16xf32>
    %194 = tpu.matmul %192, %193, %cst_79 {dimension_numbers = #tpu.dot_dimension_numbers<[1], [1], [0], [0], [0, 0, 1, 0], [], []>} : vector<16x32xf32>, vector<16x32xf32>, vector<16x16xf32> -> vector<16x16xf32>
    "tpu.trace_stop"() : () -> ()
    %195 = arith.addf %194, %147 : vector<16x16xf32>
    %cst_80 = arith.constant dense<0xFF800000> : vector<16xf32>
    %196 = vector.multi_reduction <maximumf>, %195, %cst_80 [1] : vector<16x16xf32> to vector<16xf32>
    %197 = vector.shape_cast %196 : vector<16xf32> to vector<16x1xf32>
    %198 = vector.broadcast %197 : vector<16x1xf32> to vector<16x16xf32>
    %199 = arith.subf %195, %198 : vector<16x16xf32>
    %200 = math.exp %199 : vector<16x16xf32>
    %cst_81 = arith.constant dense<0.000000e+00> : vector<16xf32>
    %201 = vector.multi_reduction <add>, %200, %cst_81 [1] : vector<16x16xf32> to vector<16xf32>
    %202 = vector.shape_cast %201 : vector<16xf32> to vector<16x1xf32>
    %203 = tpu.reciprocal %202 {approx = true} : vector<16x1xf32> -> vector<16x1xf32>
    %204 = arith.mulf %202, %203 : vector<16x1xf32>
    %cst_82 = arith.constant 2.000000e+00 : f32
    %205 = vector.broadcast %cst_82 : f32 to vector<16x1xf32>
    %206 = arith.subf %205, %204 : vector<16x1xf32>
    %207 = arith.mulf %203, %206 : vector<16x1xf32>
    %208 = vector.broadcast %207 : vector<16x1xf32> to vector<16x16xf32>
    %209 = arith.mulf %200, %208 : vector<16x16xf32>
    %210 = vector.extract_strided_slice %146 {offsets = [0, 64], sizes = [16, 32], strides = [1, 1]} : vector<16x128xf32> to vector<16x32xf32>
    %cst_83 = arith.constant dense<0.000000e+00> : vector<16x32xf32>
    %211 = tpu.matmul %209, %210, %cst_83 {dimension_numbers = #tpu.dot_dimension_numbers<[1], [0], [0], [1], [0, 0, 1, 1], [], []>} : vector<16x16xf32>, vector<16x32xf32>, vector<16x32xf32> -> vector<16x32xf32>
    %c0_84 = arith.constant 0 : index
    %c64_85 = arith.constant 64 : index
    %212 = vector.load %arg19[%c0_84, %c64_85] : memref<16x128xf32, #tpu.memory_space<vmem>>, vector<16x32xf32>
    tpu.vector_store %arg19[%c0_84, %c64_85], %211 {strides = array<i32>} : memref<16x128xf32, #tpu.memory_space<vmem>>, vector<16x32xf32>,
    %213 = vector.extract_strided_slice %145 {offsets = [0, 96], sizes = [16, 32], strides = [1, 1]} : vector<16x128xf32> to vector<16x32xf32>
    %214 = vector.extract_strided_slice %142 {offsets = [0, 96], sizes = [16, 32], strides = [1, 1]} : vector<16x128xf32> to vector<16x32xf32>
    "tpu.trace_start"() <{level = 10 : i32, message = "nd,md->nm"}> : () -> ()
    %cst_86 = arith.constant dense<0.000000e+00> : vector<16x16xf32>
    %215 = tpu.matmul %213, %214, %cst_86 {dimension_numbers = #tpu.dot_dimension_numbers<[1], [1], [0], [0], [0, 0, 1, 0], [], []>} : vector<16x32xf32>, vector<16x32xf32>, vector<16x16xf32> -> vector<16x16xf32>
    "tpu.trace_stop"() : () -> ()
    %216 = arith.addf %215, %147 : vector<16x16xf32>
    %cst_87 = arith.constant dense<0xFF800000> : vector<16xf32>
    %217 = vector.multi_reduction <maximumf>, %216, %cst_87 [1] : vector<16x16xf32> to vector<16xf32>
    %218 = vector.shape_cast %217 : vector<16xf32> to vector<16x1xf32>
    %219 = vector.broadcast %218 : vector<16x1xf32> to vector<16x16xf32>
    %220 = arith.subf %216, %219 : vector<16x16xf32>
    %221 = math.exp %220 : vector<16x16xf32>
    %cst_88 = arith.constant dense<0.000000e+00> : vector<16xf32>
    %222 = vector.multi_reduction <add>, %221, %cst_88 [1] : vector<16x16xf32> to vector<16xf32>
    %223 = vector.shape_cast %222 : vector<16xf32> to vector<16x1xf32>
    %224 = tpu.reciprocal %223 {approx = true} : vector<16x1xf32> -> vector<16x1xf32>
    %225 = arith.mulf %223, %224 : vector<16x1xf32>
    %cst_89 = arith.constant 2.000000e+00 : f32
    %226 = vector.broadcast %cst_89 : f32 to vector<16x1xf32>
    %227 = arith.subf %226, %225 : vector<16x1xf32>
    %228 = arith.mulf %224, %227 : vector<16x1xf32>
    %229 = vector.broadcast %228 : vector<16x1xf32> to vector<16x16xf32>
    %230 = arith.mulf %221, %229 : vector<16x16xf32>
    %231 = vector.extract_strided_slice %146 {offsets = [0, 96], sizes = [16, 32], strides = [1, 1]} : vector<16x128xf32> to vector<16x32xf32>
    %cst_90 = arith.constant dense<0.000000e+00> : vector<16x32xf32>
    %232 = tpu.matmul %230, %231, %cst_90 {dimension_numbers = #tpu.dot_dimension_numbers<[1], [0], [0], [1], [0, 0, 1, 1], [], []>} : vector<16x16xf32>, vector<16x32xf32>, vector<16x32xf32> -> vector<16x32xf32>
    %c0_91 = arith.constant 0 : index
    %c96_92 = arith.constant 96 : index
    %233 = vector.load %arg19[%c0_91, %c96_92] : memref<16x128xf32, #tpu.memory_space<vmem>>, vector<16x32xf32>
    tpu.vector_store %arg19[%c0_91, %c96_92], %232 {strides = array<i32>} : memref<16x128xf32, #tpu.memory_space<vmem>>, vector<16x32xf32>,
    %c0_93 = arith.constant 0 : index
    %c0_94 = arith.constant 0 : index
    %234 = vector.load %arg19[%c0_93, %c0_94] : memref<16x128xf32, #tpu.memory_space<vmem>>, vector<16x128xf32>
    %cst_95 = arith.constant dense<0.000000e+00> : vector<16x128xf32>
    %235 = tpu.matmul %234, %148, %cst_95 {dimension_numbers = #tpu.dot_dimension_numbers<[1], [0], [0], [1], [0, 0, 1, 1], [], []>} : vector<16x128xf32>, vector<128x128xf32>, vector<16x128xf32> -> vector<16x128xf32>
    %236 = vector.broadcast %149 : vector<1x128xf32> to vector<16x128xf32>
    %237 = arith.addf %235, %236 : vector<16x128xf32>
    %238 = arith.addf %237, %119 : vector<16x128xf32>
    %c0_96 = arith.constant 0 : index
    %c0_97 = arith.constant 0 : index
    %239 = vector.load %arg6[%c0_96, %c0_97] : memref<1x128xf32, #tpu.memory_space<vmem>>, vector<1x128xf32>
    %cst_98 = arith.constant dense<0.000000e+00> : vector<16xf32>
    %240 = vector.multi_reduction <add>, %238, %cst_98 [1] : vector<16x128xf32> to vector<16xf32>
    %241 = vector.shape_cast %240 : vector<16xf32> to vector<16x1xf32>
    %cst_99 = arith.constant 1.280000e+02 : f32
    %242 = vector.broadcast %cst_99 : f32 to vector<16x1xf32>
    %243 = arith.divf %241, %242 : vector<16x1xf32>
    %244 = vector.broadcast %243 : vector<16x1xf32> to vector<16x128xf32>
    %245 = arith.subf %238, %244 : vector<16x128xf32>
    %246 = arith.mulf %245, %245 : vector<16x128xf32>
    %cst_100 = arith.constant dense<0.000000e+00> : vector<16xf32>
    %247 = vector.multi_reduction <add>, %246, %cst_100 [1] : vector<16x128xf32> to vector<16xf32>
    %248 = vector.shape_cast %247 : vector<16xf32> to vector<16x1xf32>
    %cst_101 = arith.constant 1.280000e+02 : f32
    %249 = vector.broadcast %cst_101 : f32 to vector<16x1xf32>
    %250 = arith.divf %248, %249 : vector<16x1xf32>
    %251 = vector.broadcast %243 : vector<16x1xf32> to vector<16x128xf32>
    %252 = arith.subf %238, %251 : vector<16x128xf32>
    %cst_102 = arith.constant 9.99999974E-6 : f32
    %253 = vector.broadcast %cst_102 : f32 to vector<16x1xf32>
    %254 = arith.addf %250, %253 : vector<16x1xf32>
    %255 = math.rsqrt %254 : vector<16x1xf32>
    %256 = vector.broadcast %255 : vector<16x1xf32> to vector<16x128xf32>
    %257 = arith.mulf %252, %256 : vector<16x128xf32>
    %258 = vector.broadcast %239 : vector<1x128xf32> to vector<16x128xf32>
    %259 = arith.mulf %257, %258 : vector<16x128xf32>
    %c0_103 = arith.constant 0 : index
    %c0_104 = arith.constant 0 : index
    %260 = vector.load %arg14[%c0_103, %c0_104] : memref<128x512xf32, #tpu.memory_space<vmem>>, vector<128x512xf32>
    %cst_105 = arith.constant dense<0.000000e+00> : vector<16x512xf32>
    %261 = tpu.matmul %259, %260, %cst_105 {dimension_numbers = #tpu.dot_dimension_numbers<[1], [0], [0], [1], [0, 0, 1, 1], [], []>} : vector<16x128xf32>, vector<128x512xf32>, vector<16x512xf32> -> vector<16x512xf32>
    %c0_106 = arith.constant 0 : index
    %c0_107 = arith.constant 0 : index
    %262 = vector.load %arg15[%c0_106, %c0_107] : memref<1x512xf32, #tpu.memory_space<vmem>>, vector<1x512xf32>
    %263 = vector.broadcast %262 : vector<1x512xf32> to vector<16x512xf32>
    %264 = arith.addf %261, %263 : vector<16x512xf32>
    %cst_108 = arith.constant 0.000000e+00 : f32
    %265 = vector.broadcast %cst_108 : f32 to vector<16x512xf32>
    %266 = arith.maximumf %264, %265 : vector<16x512xf32>
    %c0_109 = arith.constant 0 : index
    %c0_110 = arith.constant 0 : index
    %267 = vector.load %arg16[%c0_109, %c0_110] : memref<512x128xf32, #tpu.memory_space<vmem>>, vector<512x128xf32>
    %cst_111 = arith.constant dense<0.000000e+00> : vector<16x128xf32>
    %268 = tpu.matmul %266, %267, %cst_111 {dimension_numbers = #tpu.dot_dimension_numbers<[1], [0], [0], [1], [0, 0, 1, 1], [], []>} : vector<16x512xf32>, vector<512x128xf32>, vector<16x128xf32> -> vector<16x128xf32>
    %c0_112 = arith.constant 0 : index
    %c0_113 = arith.constant 0 : index
    %269 = vector.load %arg17[%c0_112, %c0_113] : memref<1x128xf32, #tpu.memory_space<vmem>>, vector<1x128xf32>
    %270 = vector.broadcast %269 : vector<1x128xf32> to vector<16x128xf32>
    %271 = arith.addf %268, %270 : vector<16x128xf32>
    %272 = arith.addf %271, %238 : vector<16x128xf32>
    %c0_114 = arith.constant 0 : index
    %c0_115 = arith.constant 0 : index
    %273 = vector.load %arg18[%c0_114, %c0_115] : memref<16x128xf32, #tpu.memory_space<vmem>>, vector<16x128xf32>
    tpu.vector_store %arg18[%c0_114, %c0_115], %272 {strides = array<i32>} : memref<16x128xf32, #tpu.memory_space<vmem>>, vector<16x128xf32>,
    return
  }
}

</mosaic_0001>

<bundles_post_ra>
// kernel: tpu_custom_call.1
= control target key start
LH: loop header
LB: loop body
LE: loop exit
PB: predicated region body
PF: predicated region fallthrough
CT: control target
= control target key end

     0   :  { %s4533_s0 = inlined_call_operand.hbm [shape: f32[16,128], index: 0, kind: input, shape index: {}]   ;;  %s4534_s1 = inlined_call_operand.hbm [shape: f32[16,128], index: 1, kind: input, shape index: {}]   ;;  %s4535_s2 = inlined_call_operand.hbm [shape: f32[16,16], index: 2, kind: input, shape index: {}]   ;;  %s4536_s3 = inlined_call_operand.hbm [shape: f32[16,16], index: 3, kind: input, shape index: {}]   ;;  %s4537_s4 = inlined_call_operand.vmem [shape: f32[1,128], index: 4, kind: input, shape index: {}]   ;;  %s4538_s5 = inlined_call_operand.vmem [shape: f32[1,128], index: 5, kind: input, shape index: {}]   ;;  %s4539_s6 = inlined_call_operand.vmem [shape: f32[1,128], index: 6, kind: input, shape index: {}]   ;;  %s4540_s7 = inlined_call_operand.hbm [shape: f32[128,384], index: 7, kind: input, shape index: {}]   ;;  %s4541_s8 = inlined_call_operand.hbm [shape: f32[128,128], index: 8, kind: input, shape index: {}]   ;;  %s4542_s9 = inlined_call_operand.vmem [shape: f32[1,128], index: 9, kind: input, shape index: {}]   ;;  %s4543_s10 = inlined_call_operand.hbm [shape: f32[128,128], index: 10, kind: input, shape index: {}]   ;;  %s4544_s11 = inlined_call_operand.hbm [shape: f32[128,256], index: 11, kind: input, shape index: {}]   ;;  %s4545_s12 = inlined_call_operand.hbm [shape: f32[128,128], index: 12, kind: input, shape index: {}]   ;;  %s4546_s13 = inlined_call_operand.vmem [shape: f32[1,128], index: 13, kind: input, shape index: {}]   ;;  %s4547_s14 = inlined_call_operand.hbm [shape: f32[128,512], index: 14, kind: input, shape index: {}]   ;;  %s4548_s15 = inlined_call_operand.vmem [shape: f32[1,512], index: 15, kind: input, shape index: {}]   ;;  %s4549_s16 = inlined_call_operand.hbm [shape: f32[512,128], index: 16, kind: input, shape index: {}]   ;;  %s4550_s17 = inlined_call_operand.vmem [shape: f32[1,128], index: 17, kind: input, shape index: {}]   ;;  %s4551_s18 = inlined_call_operand.hbm [shape: f32[16,128], index: 18, kind: output, shape index: {}]  }
   0x1   :  { %4552 = sst [smem:[#allocation29_spill]] %s4533_s0 }
   0x2   :  { %4553 = sst [smem:[#allocation30_spill]] %s4534_s1 }
   0x3   :  { %4554 = sst [smem:[#allocation31_spill]] %s4535_s2 }
   0x4   :  { %23 = vsyncpa [#allocation4], 0 }
   0x5   :  { %24 = vsyncpa [#allocation7], 0 }
   0x6   :  { %25 = vsyncpa [#allocation10], 0 }
   0x7   :  { %26 = vsyncpa [#allocation13], 0 }
   0x8   :  { %27 = vsyncpa [#allocation16], 0 }
   0x9   :  { %28 = vsyncpa [#allocation19], 0 }
   0xa   :  { %29 = vsyncpa [#allocation5], 0  ;;  %s3982_s27 = smov [#allocation6]   ;;  %s3983_s29 = smov [#allocation9]  }
   0xb   :  { %s47_s28 = sshll.u32 %s3982_s27, 4  ;;  %s71_s30 = sshll.u32 %s3983_s29, 4  ;;  %s48_s28 = int_to_ptr.vmem [resolvable:$true] %s47_s28  ;;  %s72_s30 = int_to_ptr.vmem [resolvable:$true] %s71_s30 }
   0xc   :  { %s3736_s0 = scalar_lea.vmem %s48_s28, 256  ;;  %p3741_p1 = scmp.lt.s32.totalorder %s48_s28, %s48_s28 }
   0xd   :  { %p3737_p0 = scmp.ne.s32.totalorder %s48_s28, %s3736_s0  ;;  %p3742_p2 = scmp.lt.s32.totalorder %s3736_s0, %s3736_s0 }
   0xf   :  { %p3743_p3 = por %p3742_p2, %p3741_p1 }
  0x11   :  { %p3744_p4 = pnand %p3743_p3, %p3737_p0 }
  0x13   :  { %3747 = shalt.err (!%p3744_p4)
}
  0x14   :  { %s3984_s19 = smov 128   ;;  %s3985_s1 = smov 8  }
  0x15   :  { %s4555_s22 = sld [smem:[#allocation30_spill]]  ;;  %s3756_s2 = scalar_lea.vmem %s72_s30, 256 }
  0x16   :  { %p3757_p5 = scmp.ne.s32.totalorder %s72_s30, %s3756_s2  ;;  %p3761_p6 = scmp.lt.s32.totalorder %s72_s30, %s72_s30 }
  0x17   :  { %p3762_p7 = scmp.lt.s32.totalorder %s3756_s2, %s3756_s2 }
  0x19   :  { %p3763_p8 = por %p3762_p7, %p3761_p6 }
  0x1b   :  { %53 = dma.hbm_to_vmem [thread:$0]  %s4555_s22, 256, %s48_s28, [#allocation7], %s3984_s19, %s3984_s19, %s3985_s1  }
  0x1c   :  { %p3764_p9 = pnand %p3763_p8, %p3757_p5 }
  0x1e   :  { %3767 = shalt.err (!%p3764_p9)
}
  0x1f   :  { %77 = dma.hbm_to_vmem [thread:$0]  %s4536_s3, 256, %s72_s30, [#allocation10], %s3984_s19, %s3984_s19, %s3985_s1  }
  0x20   :  { %s3986_s25 = smov [#allocation12]   ;;  %s3987_s27 = smov [#allocation15]  }
  0x21   :  { %s101_s26 = sshll.u32 %s3986_s25, 4  ;;  %s127_s29 = sshll.u32 %s3987_s27, 4  ;;  %s102_s26 = int_to_ptr.vmem [resolvable:$true] %s101_s26  ;;  %s128_s29 = int_to_ptr.vmem [resolvable:$true] %s127_s29 }
  0x22   :  { %s3776_s28 = scalar_lea.vmem %s102_s26, 2048  ;;  %p3781_p11 = scmp.lt.s32.totalorder %s102_s26, %s102_s26 }
  0x23   :  { %p3777_p10 = scmp.ne.s32.totalorder %s102_s26, %s3776_s28  ;;  %p3782_p12 = scmp.lt.s32.totalorder %s3776_s28, %s3776_s28 }
  0x25   :  { %p3783_p13 = por %p3782_p12, %p3781_p11 }
  0x27   :  { %p3784_p0 = pnand %p3783_p13, %p3777_p10 }
  0x29   :  { %3787 = shalt.err (!%p3784_p0)
}
  0x2a   :  { %107 = dma.hbm_to_vmem [thread:$0]  %s4541_s8, 2048, %s102_s26, [#allocation13], %s3984_s19, %s3984_s19, %s3985_s1  }
  0x2b   :  { %s3796_s3 = scalar_lea.vmem %s128_s29, 4096  ;;  %p3801_p2 = scmp.lt.s32.totalorder %s128_s29, %s128_s29 }
  0x2c   :  { %p3797_p1 = scmp.ne.s32.totalorder %s128_s29, %s3796_s3  ;;  %p3802_p3 = scmp.lt.s32.totalorder %s3796_s3, %s3796_s3 }
  0x2e   :  { %p3803_p4 = por %p3802_p3, %p3801_p2 }
  0x30   :  { %p3804_p5 = pnand %p3803_p4, %p3797_p1 }
  0x32   :  { %3807 = shalt.err (!%p3804_p5)
}
  0x33   :  { %s3988_s30 = smov 256   ;;  %s3989_s21 = smov 16  }
  0x34   :  { %133 = dma.hbm_to_vmem [thread:$0]  %s4544_s11, 4096, %s128_s29, [#allocation16], %s3988_s30, %s3988_s30, %s3989_s21  }
  0x35   :  { %s3990_s23 = smov [#allocation18]  }
  0x36   :  { %s153_s24 = sshll.u32 %s3990_s23, 4  ;;  %s154_s24 = int_to_ptr.vmem [resolvable:$true] %s153_s24 }
  0x37   :  { %s3816_s25 = scalar_lea.vmem %s154_s24, 8192  ;;  %p3821_p7 = scmp.lt.s32.totalorder %s154_s24, %s154_s24 }
  0x38   :  { %p3817_p6 = scmp.ne.s32.totalorder %s154_s24, %s3816_s25  ;;  %p3822_p8 = scmp.lt.s32.totalorder %s3816_s25, %s3816_s25 }
  0x3a   :  { %p3823_p9 = por %p3822_p8, %p3821_p7 }
  0x3c   :  { %p3824_p10 = pnand %p3823_p9, %p3817_p6 }
  0x3e   :  { %3827 = shalt.err (!%p3824_p10)
}
  0x3f   :  { %s3991_s8 = smov 512   ;;  %s3992_s26 = smov 32  }
  0x40   :  { %159 = dma.hbm_to_vmem [thread:$0]  %s4547_s14, 8192, %s154_s24, [#allocation19], %s3991_s8, %s3991_s8, %s3992_s26  }
  0x41   :  { %s3993_s0 = smov [#allocation3]   ;;  %s3994_s11 = smov [#allocation8]  }
  0x42   :  { %s35_s20 = sshll.u32 %s3993_s0, 4  ;;  %s59_s29 = sshll.u32 %s3994_s11, 4  ;;  %s36_s20 = int_to_ptr.vmem [resolvable:$true] %s35_s20  ;;  %s60_s29 = int_to_ptr.vmem [resolvable:$true] %s59_s29 }
  0x43   :  { %s3836_s3 = scalar_lea.vmem %s36_s20, 256  ;;  %p3841_p12 = scmp.lt.s32.totalorder %s36_s20, %s36_s20 }
  0x44   :  { %p3837_p11 = scmp.ne.s32.totalorder %s36_s20, %s3836_s3  ;;  %p3842_p13 = scmp.lt.s32.totalorder %s3836_s3, %s3836_s3 }
  0x46   :  { %p3843_p0 = por %p3842_p13, %p3841_p12 }
  0x48   :  { %p3844_p1 = pnand %p3843_p0, %p3837_p11 }
  0x4a   :  { %3847 = shalt.err (!%p3844_p1)
}
  0x4b   :  { %s4556_s22 = sld [smem:[#allocation29_spill]]  ;;  %s3856_s14 = scalar_lea.vmem %s60_s29, 256 }
  0x4c   :  { %p3857_p2 = scmp.ne.s32.totalorder %s60_s29, %s3856_s14  ;;  %p3861_p3 = scmp.lt.s32.totalorder %s60_s29, %s60_s29 }
  0x4d   :  { %p3862_p4 = scmp.lt.s32.totalorder %s3856_s14, %s3856_s14 }
  0x4f   :  { %p3863_p5 = por %p3862_p4, %p3861_p3 }
  0x51   :  { %41 = dma.hbm_to_vmem [thread:$0]  %s4556_s22, 256, %s36_s20, [#allocation4], %s3984_s19, %s3984_s19, %s3985_s1  }
  0x52   :  { %p3864_p6 = pnand %p3863_p5, %p3857_p2 }
  0x54   :  { %3867 = shalt.err (!%p3864_p6)
}
  0x55   :  { %s4557_s24 = sld [smem:[#allocation31_spill]]  ;;  %s3995_s25 = smov [#allocation11]  }
  0x56   :  { %s89_s8 = sshll.u32 %s3995_s25, 4  ;;  %s90_s8 = int_to_ptr.vmem [resolvable:$true] %s89_s8 }
  0x57   :  { %s3876_s27 = scalar_lea.vmem %s90_s8, 6144  ;;  %p3881_p8 = scmp.lt.s32.totalorder %s90_s8, %s90_s8 }
  0x58   :  { %p3877_p7 = scmp.ne.s32.totalorder %s90_s8, %s3876_s27  ;;  %p3882_p9 = scmp.lt.s32.totalorder %s3876_s27, %s3876_s27 }
  0x5a   :  { %p3883_p10 = por %p3882_p9, %p3881_p8 }
  0x5b   :  { %65 = dma.hbm_to_vmem [thread:$0]  %s4557_s24, 256, %s60_s29, [#allocation7], %s3984_s19, %s3984_s19, %s3985_s1  }
  0x5c   :  { %p3884_p11 = pnand %p3883_p10, %p3877_p7 }
  0x5e   :  { %3887 = shalt.err (!%p3884_p11)
}
  0x5f   :  { %s3996_s28 = smov 384   ;;  %s3997_s0 = smov 24  }
  0x60   :  { %95 = dma.hbm_to_vmem [thread:$0]  %s4540_s7, 6144, %s90_s8, [#allocation10], %s3996_s28, %s3996_s28, %s3997_s0  }
  0x61   :  { %s3998_s3 = smov [#allocation14]   ;;  %s3999_s21 = smov [#allocation17]  }
  0x62   :  { %s115_s30 = sshll.u32 %s3998_s3, 4  ;;  %s139_s29 = sshll.u32 %s3999_s21, 4  ;;  %s116_s30 = int_to_ptr.vmem [resolvable:$true] %s115_s30  ;;  %s140_s29 = int_to_ptr.vmem [resolvable:$true] %s139_s29 }
  0x63   :  { %s3896_s22 = scalar_lea.vmem %s116_s30, 2048  ;;  %p3901_p13 = scmp.lt.s32.totalorder %s116_s30, %s116_s30 }
  0x64   :  { %p3897_p12 = scmp.ne.s32.totalorder %s116_s30, %s3896_s22  ;;  %p3902_p0 = scmp.lt.s32.totalorder %s3896_s22, %s3896_s22 }
  0x66   :  { %p3903_p1 = por %p3902_p0, %p3901_p13 }
  0x68   :  { %p3904_p2 = pnand %p3903_p1, %p3897_p12 }
  0x6a   :  { %3907 = shalt.err (!%p3904_p2)
}
  0x6b   :  { %121 = dma.hbm_to_vmem [thread:$0]  %s4543_s10, 2048, %s116_s30, [#allocation13], %s3984_s19, %s3984_s19, %s3985_s1  }
  0x6c   :  { %s3916_s7 = scalar_lea.vmem %s140_s29, 2048  ;;  %p3921_p4 = scmp.lt.s32.totalorder %s140_s29, %s140_s29 }
  0x6d   :  { %p3917_p3 = scmp.ne.s32.totalorder %s140_s29, %s3916_s7  ;;  %p3922_p5 = scmp.lt.s32.totalorder %s3916_s7, %s3916_s7 }
  0x6f   :  { %p3923_p6 = por %p3922_p5, %p3921_p4 }
  0x71   :  { %p3924_p7 = pnand %p3923_p6, %p3917_p3 }
  0x73   :  { %3927 = shalt.err (!%p3924_p7)
}
  0x74   :  { %145 = dma.hbm_to_vmem [thread:$0]  %s4545_s12, 2048, %s140_s29, [#allocation16], %s3984_s19, %s3984_s19, %s3985_s1  }
  0x75   :  { %s4000_s25 = smov [#allocation20]  }
  0x76   :  { %s167_s8 = sshll.u32 %s4000_s25, 4  ;;  %s168_s8 = int_to_ptr.vmem [resolvable:$true] %s167_s8 }
  0x77   :  { %s3936_s27 = scalar_lea.vmem %s168_s8, 8192  ;;  %p3941_p9 = scmp.lt.s32.totalorder %s168_s8, %s168_s8 }
  0x78   :  { %p3937_p8 = scmp.ne.s32.totalorder %s168_s8, %s3936_s27  ;;  %p3942_p10 = scmp.lt.s32.totalorder %s3936_s27, %s3936_s27 }
  0x7a   :  { %p3943_p11 = por %p3942_p10, %p3941_p9 }
  0x7c   :  { %p3944_p12 = pnand %p3943_p11, %p3937_p8 }
  0x7e   :  { %3947 = shalt.err (!%p3944_p12)
}
  0x7f   :  { %173 = dma.hbm_to_vmem [thread:$0]  %s4549_s16, 8192, %s168_s8, [#allocation19], %s3984_s19, %s3984_s19, %s3985_s1  }
  0x80   :  { %3968 = dma.done.wait [#allocation4], 256  }
  0x81   :  { %3969 = vsyncadd [#allocation4], 4294967040 }
  0x82   :  { %3970 = dma.done.wait [#allocation7], 512  }
  0x83   :  { %3971 = vsyncadd [#allocation7], 4294966784 }
  0x84   :  { %3972 = dma.done.wait [#allocation10], 6400  }
  0x85   :  { %3973 = vsyncadd [#allocation10], 4294960896 }
  0x86   :  { %3974 = dma.done.wait [#allocation13], 4096  }
  0x87   :  { %3975 = vsyncadd [#allocation13], 4294963200 }
  0x88   :  { %3976 = dma.done.wait [#allocation16], 6144  }
  0x89   :  { %3977 = vsyncadd [#allocation16], 4294961152 }
  0x8a   :  { %3978 = dma.done.wait [#allocation19], 16384  }
  0x8b   :  { %3979 = vsyncadd [#allocation19], 4294950912  ;;  %v4158_v0 = vld [vmem:[#allocation3] sm:$0xff]  ;;  %v4161_v1 = vld [vmem:[#allocation3 + $0x8] sm:$0xff]  ;;  %v4001_v56 = vmov 0.0   ;;  %vm464_vm0 = vcmask 261120  }
  0x8c   :  { %214 = vadd.xlane.f32.xlu0 %v4158_v0  ;;  %v291_v2 = vld [vmem:[#allocation11 + $0x170] sm:$0xff]  ;;  %v290_v3 = vld [vmem:[#allocation11 + $0x168] sm:$0xff]  ;;  %v288_v4 = vld [vmem:[#allocation11 + $0x158] sm:$0xff]  ;;  %357 = vmatprep.mubr.f32.mxu0 %v4001_v56  ;;  %vm552_vm1 = vcmask 130048   ;;  %s4003_s0 = smov 64   ;;  %vm880_vm2 = vcmask 523520  }
  0x8d   :  { %293 = vmatprep.subr.mxu0 %v291_v2  ;;  %v287_v5 = vld [vmem:[#allocation11 + $0x150] sm:$0xff]  ;;  %v292_v6 = vld [vmem:[#allocation11 + $0x178] sm:$0xff]  ;;  %v285_v7 = vld [vmem:[#allocation11 + $0x140] sm:$0xff]  ;;  %vm1097_vm3 = vcmask 785920   ;;  %vm1314_vm4 = vcmask 1048320   ;;  %s4004_s22 = smov [#allocation21]  }
  0x8e   :  { %294 = vmatpush1.msra.mxu0 %v290_v3  ;;  %3377 = vmatprep.subr.mxu1 %v292_v6  ;;  %v289_v8 = vld [vmem:[#allocation11 + $0x160] sm:$0xff]  ;;  %v284_v9 = vld [vmem:[#allocation11 + $0x138] sm:$0xff]  ;;  %v286_v10 = vld [vmem:[#allocation11 + $0x148] sm:$0xff]  ;;  %s3094_s14 = sshll.u32 %s4004_s22, 4  ;;  %s3095_s14 = int_to_ptr.vmem [resolvable:$true] %s3094_s14 }
  0x8f   :  { %295 = vmatprep.subr.mxu0 %v288_v4  ;;  %3378 = vmatpush3.msra.mxu1 %v292_v6  ;;  %v282_v11 = vld [vmem:[#allocation11 + $0x128] sm:$0xff]  ;;  %v281_v12 = vld [vmem:[#allocation11 + $0x120] sm:$0xff]  ;;  %v279_v13 = vld [vmem:[#allocation11 + $0x110] sm:$0xff]  ;;  %p3953_p0 = scmp.lt.s32.totalorder %s3095_s14, %s3095_s14 }
  0x90   :  { %216 = vadd.xlane.f32.xlu0 %v4161_v1  ;;  %296 = vmatpush1.msra.mxu0 %v287_v5  ;;  %v278_v14 = vld [vmem:[#allocation11 + $0x108] sm:$0xff]  ;;  %v276_v23 = vld [vmem:[#allocation11 + $0xf8] sm:$0xff]  ;;  %v283_v24 = vld [vmem:[#allocation11 + $0x130] sm:$0xff] }
  0x91   :  { %3379 = vmatprep.subr.mxu1 %v289_v8  ;;  %297 = vmatprep.subr.mxu0 %v285_v7  ;;  %v275_v25 = vld [vmem:[#allocation11 + $0xf0] sm:$0xff]  ;;  %v273_v26 = vld [vmem:[#allocation11 + $0xe0] sm:$0xff]  ;;  %v280_v27 = vld [vmem:[#allocation11 + $0x118] sm:$0xff] }
  0x92   :  { %3380 = vmatpush3.msra.mxu1 %v289_v8  ;;  %298 = vmatpush1.msra.mxu0 %v284_v9  ;;  %v272_v28 = vld [vmem:[#allocation11 + $0xd8] sm:$0xff]  ;;  %v270_v29 = vld [vmem:[#allocation11 + $0xc8] sm:$0xff]  ;;  %v277_v30 = vld [vmem:[#allocation11 + $0x100] sm:$0xff] }
  0x93   :  { %3381 = vmatprep.subr.mxu1 %v286_v10  ;;  %299 = vmatprep.subr.mxu0 %v282_v11  ;;  %v269_v31 = vld [vmem:[#allocation11 + $0xc0] sm:$0xff]  ;;  %v267_v32 = vld [vmem:[#allocation11 + $0xb0] sm:$0xff]  ;;  %v274_v33 = vld [vmem:[#allocation11 + $0xe8] sm:$0xff] }
  0x94   :  { %3382 = vmatpush3.msra.mxu1 %v286_v10  ;;  %300 = vmatpush1.msra.mxu0 %v281_v12  ;;  %v266_v34 = vld [vmem:[#allocation11 + $0xa8] sm:$0xff]  ;;  %v264_v35 = vld [vmem:[#allocation11 + $0x98] sm:$0xff]  ;;  %v271_v36 = vld [vmem:[#allocation11 + $0xd0] sm:$0xff] }
  0x95   :  { %301 = vmatprep.subr.mxu0 %v279_v13  ;;  %3383 = vmatprep.subr.mxu1 %v283_v24  ;;  %v263_v37 = vld [vmem:[#allocation11 + $0x90] sm:$0xff]  ;;  %v261_v38 = vld [vmem:[#allocation11 + $0x80] sm:$0xff]  ;;  %v268_v39 = vld [vmem:[#allocation11 + $0xb8] sm:$0xff] }
  0x96   :  { %302 = vmatpush1.msra.mxu0 %v278_v14  ;;  %3384 = vmatpush3.msra.mxu1 %v283_v24  ;;  %v260_v40 = vld [vmem:[#allocation11 + $0x78] sm:$0xff]  ;;  %v258_v41 = vld [vmem:[#allocation11 + $0x68] sm:$0xff]  ;;  %v265_v42 = vld [vmem:[#allocation11 + $0xa0] sm:$0xff] }
  0x97   :  { %303 = vmatprep.subr.mxu0 %v276_v23  ;;  %3385 = vmatprep.subr.mxu1 %v280_v27  ;;  %v257_v43 = vld [vmem:[#allocation11 + $0x60] sm:$0xff]  ;;  %v255_v44 = vld [vmem:[#allocation11 + $0x50] sm:$0xff]  ;;  %v262_v45 = vld [vmem:[#allocation11 + $0x88] sm:$0xff] }
  0x98   :  { %304 = vmatpush1.msra.mxu0 %v275_v25  ;;  %3386 = vmatpush3.msra.mxu1 %v280_v27  ;;  %v254_v46 = vld [vmem:[#allocation11 + $0x48] sm:$0xff]  ;;  %v252_v47 = vld [vmem:[#allocation11 + $0x38] sm:$0xff]  ;;  %v259_v48 = vld [vmem:[#allocation11 + $0x70] sm:$0xff] }
  0x99   :  { %305 = vmatprep.subr.mxu0 %v273_v26  ;;  %3387 = vmatprep.subr.mxu1 %v277_v30  ;;  %v251_v49 = vld [vmem:[#allocation11 + $0x30] sm:$0xff]  ;;  %v249_v50 = vld [vmem:[#allocation11 + $0x20] sm:$0xff]  ;;  %v256_v51 = vld [vmem:[#allocation11 + $0x58] sm:$0xff] }
  0x9a   :  { %306 = vmatpush1.msra.mxu0 %v272_v28  ;;  %3388 = vmatpush3.msra.mxu1 %v277_v30  ;;  %v248_v52 = vld [vmem:[#allocation11 + $0x18] sm:$0xff]  ;;  %v246_v53 = vld [vmem:[#allocation11 + $0x8] sm:$0xff]  ;;  %v253_v54 = vld [vmem:[#allocation11 + $0x40] sm:$0xff] }
  0x9b   :  { %307 = vmatprep.subr.mxu0 %v270_v29  ;;  %3389 = vmatprep.subr.mxu1 %v274_v33  ;;  %v245_v55 = vld [vmem:[#allocation11] sm:$0xff]  ;;  %v250_v57 = vld [vmem:[#allocation11 + $0x28] sm:$0xff]  ;;  %v247_v58 = vld [vmem:[#allocation11 + $0x10] sm:$0xff] }
  0x9c   :  { %308 = vmatpush1.msra.mxu0 %v269_v31  ;;  %3390 = vmatpush3.msra.mxu1 %v274_v33  ;;  %v3111_v4 = vld [vmem:[%s4537_s4] ss:$0 sm:$0xff]  ;;  %s4002_s4 = smov 96  }
  0x9d   :  { %309 = vmatprep.subr.mxu0 %v267_v32  ;;  %3391 = vmatprep.subr.mxu1 %v271_v36 }
  0x9e   :  { %310 = vmatpush1.msra.mxu0 %v266_v34  ;;  %3392 = vmatpush3.msra.mxu1 %v271_v36 }
  0x9f   :  { %311 = vmatprep.subr.mxu0 %v264_v35  ;;  %3393 = vmatprep.subr.mxu1 %v268_v39 }
  0xa0   :  { %312 = vmatpush1.msra.mxu0 %v263_v37  ;;  %3394 = vmatpush3.msra.mxu1 %v268_v39 }
  0xa1   :  { %313 = vmatprep.subr.mxu0 %v261_v38  ;;  %3395 = vmatprep.subr.mxu1 %v265_v42 }
  0xa2   :  { %314 = vmatpush1.msra.mxu0 %v260_v40  ;;  %3396 = vmatpush3.msra.mxu1 %v265_v42 }
  0xa3   :  { %315 = vmatprep.subr.mxu0 %v258_v41  ;;  %3397 = vmatprep.subr.mxu1 %v262_v45 }
  0xa4   :  { %316 = vmatpush1.msra.mxu0 %v257_v43  ;;  %3398 = vmatpush3.msra.mxu1 %v262_v45 }
  0xa5   :  { %317 = vmatprep.subr.mxu0 %v255_v44  ;;  %3399 = vmatprep.subr.mxu1 %v259_v48 }
  0xa6   :  { %318 = vmatpush1.msra.mxu0 %v254_v46  ;;  %3400 = vmatpush3.msra.mxu1 %v259_v48 }
  0xa7   :  { %319 = vmatprep.subr.mxu0 %v252_v47  ;;  %3401 = vmatprep.subr.mxu1 %v256_v51 }
  0xa8   :  { %320 = vmatpush1.msra.mxu0 %v251_v49  ;;  %3402 = vmatpush3.msra.mxu1 %v256_v51 }
  0xa9   :  { %321 = vmatprep.subr.mxu0 %v249_v50  ;;  %3403 = vmatprep.subr.mxu1 %v253_v54 }
  0xaa   :  { %322 = vmatpush1.msra.mxu0 %v248_v52  ;;  %3404 = vmatpush3.msra.mxu1 %v253_v54 }
  0xab   :  { %323 = vmatprep.subr.mxu0 %v246_v53  ;;  %3405 = vmatprep.subr.mxu1 %v250_v57 }
  0xac   :  { %324 = vmatpush1.msra.mxu0 %v245_v55  ;;  %3406 = vmatpush3.msra.mxu1 %v250_v57 }
  0xad   :  { %3407 = vmatprep.subr.mxu1 %v247_v58 }
  0xae   :  { %3408 = vmatpush3.msra.mxu1 %v247_v58 }
 0x115   :  { %v215_v15 = vpop.xlane.xlu0 %214 }
 0x116   :  { %v219_v16 = vmul.f32 0.0078125, %v215_v15 }
 0x118   :  { %v4165_v17 = vsub.f32 %v4158_v0, %v219_v16  ;;  %v4209_v16 = vld [vmem:[#allocation8 + $0x8] sm:$0xff] }
 0x119   :  { %v217_v18 = vpop.xlane.xlu0 %216 }
 0x11a   :  { %v220_v19 = vmul.f32 0.0078125, %v217_v18  ;;  %v223_v20 = vmul.f32 %v4165_v17, %v4165_v17  ;;  %v4211_v18 = vld [vmem:[#allocation8] sm:$0xff] }
 0x11c   :  { %v4170_v21 = vsub.f32 %v4161_v1, %v220_v19  ;;  %225 = vadd.xlane.f32.xlu1 %v223_v20 }
 0x11e   :  { %v224_v22 = vmul.f32 %v4170_v21, %v4170_v21 }
 0x120   :  { %227 = vadd.xlane.f32.xlu1 %v224_v22 }
 0x1a5   :  { %v226_v59 = vpop.xlane.xlu1 %225 }
 0x1a6   :  { %v229_v60 = vmul.f32 0.0078125, %v226_v59 }
 0x1a8   :  { %v231_v61 = vadd.f32 1e-05, %v229_v60 }
 0x1a9   :  { %v228_v62 = vpop.xlane.xlu1 %227 }
 0x1aa   :  { %3652 = vrsqrt.f32 %v231_v61  ;;  %v230_v63 = vmul.f32 0.0078125, %v228_v62 }
 0x1ac   :  { %v232_v2 = vadd.f32 1e-05, %v230_v63 }
 0x1ae   :  { %3654 = vrsqrt.f32 %v232_v2 }
 0x1b7   :  { %v3653_v3 = vpop.eup %3652 }
 0x1b8   :  { %v235_v5 = vmul.f32 %v3653_v3, %v4165_v17 }
 0x1ba   :  { %v243_v6 = vmul.f32 %v3111_v4, %v235_v5 }
 0x1bb   :  { %v3655_v7 = vpop.eup %3654 }
 0x1bc   :  { %358 = vmatmul.mubr.f32.vlgmr.msra.gmra.mxu0 %v243_v6  ;;  %3409 = vmatprep.mubr.f32.mxu1 %v243_v6  ;;  %v236_v8 = vmul.f32 %v3655_v7, %v4170_v21 }
 0x1bd   :  { %363 = vmatprep.mubr.f32.mxu0 %v4001_v56 }
 0x1be   :  { %v244_v9 = vmul.f32 %v3111_v4, %v236_v8 }
 0x1c0   :  { %364 = vmatmul.mubr.f32.gmra.mxu0 %v244_v9  ;;  %3410 = vmatmul.mubr.f32.vlgmr.msra.gmra.mxu1 %v244_v9 }
 0x27c   :  { %v4181_v10 = vpop.f32.mrf.mxu0 }
 0x27e   :  { %v4183_v11 = vpop.f32.mrf.mxu0 }
 0x27f   :  { %3416 = vmatprep.mubr.msk.f32.mxu0 %vm464_vm0, %v4183_v11 }
 0x280   :  { %v4187_v12 = vpop.f32.mrf.mxu0  ;;  %v4189_v13 = vpop.f32.mrf.mxu1 }
 0x281   :  { %3412 = vmatprep.subr.msk.mxu0 %vm464_vm0, %v4187_v12  ;;  %3419 = vmatprep.subr.mxu1 %v4189_v13 }
 0x282   :  { %v4194_v14 = vpop.f32.mrf.mxu1  ;;  %3413 = vmatpush3.xpose.msk.msra.mxu0 %vm464_vm0, %v4187_v12  ;;  %3420 = vmatpush3.msra.mxu1 %v4189_v13  ;;  %v4205_v15 = vpop.f32.mrf.mxu0 }
 0x283   :  { %3414 = vmatprep.subr.msk.mxu0 %vm464_vm0, %v4181_v10  ;;  %3421 = vmatprep.subr.mxu1 %v4194_v14 }
 0x284   :  { %3422 = vmatpush3.msra.mxu1 %v4194_v14 }
 0x286   :  { %3415 = vmatpush3.xpose.msk.msra.mxu0 %vm464_vm0, %v4181_v10 }
 0x289   :  { %3417 = vmatmul.mubr.msk.f32.vlgmr.msra.gmra.mxu0 %vm464_vm0, %v4205_v15 }
 0x349   :  { %v3418_v17 = vpop.f32.mrf.mxu0 }
 0x34a   :  { %v549_v19 = vadd.f32 %v3418_v17, %v4209_v16 }
 0x34b   :  { %v543_v20 = vpop.f32.mrf.mxu0 }
 0x34c   :  { %v544_v21 = vadd.f32 %v543_v20, %v4211_v18  ;;  %v556_v22 = vsel %vm552_vm1, %v549_v19, -inf }
 0x34d   :  { %557 = vmax.xlane.f32.xlu1 %v556_v22 }
 0x34e   :  { %v553_v23 = vsel %vm552_vm1, %v544_v21, -inf }
 0x34f   :  { %554 = vmax.xlane.f32.xlu0 %v553_v23 }
 0x3d6   :  { %v558_v24 = vpop.xlane.xlu1 %557 }
 0x3d7   :  { %v560_v25 = vsub.f32 %v549_v19, %v558_v24 }
 0x3d8   :  { %v555_v26 = vpop.xlane.xlu0 %554 }
 0x3d9   :  { %v563_v27 = vmul.f32 1.442695, %v560_v25  ;;  %v559_v28 = vsub.f32 %v544_v21, %v555_v26 }
 0x3db   :  { %3656 = vpow2.f32 %v563_v27  ;;  %v561_v29 = vmul.f32 1.442695, %v559_v28 }
 0x3dd   :  { %3658 = vpow2.f32 %v561_v29 }
 0x3e8   :  { %v3657_v30 = vpop.eup %3656 }
 0x3e9   :  { %v568_v31 = vsel %vm552_vm1, %v3657_v30, 0.0 }
 0x3ea   :  { %v3659_v32 = vpop.eup %3658  ;;  %569 = vadd.xlane.f32.xlu1 %v568_v31 }
 0x3eb   :  { %v565_v33 = vsel %vm552_vm1, %v3659_v32, 0.0 }
 0x3ec   :  { %566 = vadd.xlane.f32.xlu0 %v565_v33 }
 0x3fb   :  { %668 = vrot.lane.b32.xlu1 %v4181_v10, %s4002_s4 }
 0x3ff   :  { %664 = vrot.lane.b32.xlu1 %v4183_v11, %s4002_s4 }
 0x402   :  { %670 = vrot.lane.b32.xlu0 %v4187_v12, %s4002_s4 }
 0x403   :  { %889 = vrot.lane.b32.xlu1 %v4187_v12, %s4003_s0 }
 0x406   :  { %666 = vrot.lane.b32.xlu0 %v4205_v15, %s4002_s4 }
 0x407   :  { %887 = vrot.lane.b32.xlu1 %v4181_v10, %s4003_s0 }
 0x40a   :  { %883 = vrot.lane.b32.xlu0 %v4183_v11, %s4003_s0 }
 0x40b   :  { %885 = vrot.lane.b32.xlu1 %v4205_v15, %s4003_s0 }
 0x473   :  { %v570_v34 = vpop.xlane.xlu1 %569 }
 0x474   :  { %3660 = vrcp.f32 %v570_v34 }
 0x475   :  { %v567_v35 = vpop.xlane.xlu0 %566 }
 0x476   :  { %3662 = vrcp.f32 %v567_v35 }
 0x477   :  { %v669_v42 = vpop.permute.xlu1 %668 }
 0x479   :  { %v671_v36 = vpop.permute.xlu0 %670 }
 0x47a   :  { %3426 = vmatprep.subr.msk.mxu1 %vm464_vm0, %v671_v36 }
 0x47b   :  { %v665_v47 = vpop.permute.xlu1 %664 }
 0x47d   :  { %v667_v49 = vpop.permute.xlu0 %666 }
 0x47f   :  { %v890_v50 = vpop.permute.xlu1 %889 }
 0x481   :  { %v3661_v37 = vpop.eup %3660  ;;  %v884_v51 = vpop.permute.xlu0 %883 }
 0x482   :  { %v574_v38 = vmul.f32 %v3661_v37, %v570_v34 }
 0x483   :  { %v3663_v39 = vpop.eup %3662  ;;  %v888_v52 = vpop.permute.xlu1 %887 }
 0x484   :  { %v576_v40 = vsub.f32 2.0, %v574_v38  ;;  %v573_v41 = vmul.f32 %v3663_v39, %v567_v35 }
 0x486   :  { %v575_v43 = vsub.f32 2.0, %v573_v41  ;;  %v578_v44 = vmul.f32 %v3661_v37, %v576_v40 }
 0x487   :  { %v886_v53 = vpop.permute.xlu1 %885 }
 0x488   :  { %v577_v45 = vmul.f32 %v3663_v39, %v575_v43  ;;  %v580_v48 = vmul.f32 %v3657_v30, %v578_v44 }
 0x48a   :  { %v579_v46 = vmul.f32 %v3659_v32, %v577_v45 }
 0x48c   :  { %3423 = vmatprep.mubr.msk.f32.mxu1 %vm552_vm1, %v579_v46 }
 0x48d   :  { %3424 = vmatmul.mubr.msk.f32.vlgmr.msra.gmra.mxu1 %vm552_vm1, %v580_v48 }
 0x48e   :  { %3427 = vmatpush3.xpose.msk.msra.mxu1 %vm464_vm0, %v671_v36  ;;  %3430 = vmatprep.mubr.msk.f32.mxu1 %vm464_vm0, %v665_v47 }
 0x48f   :  { %3428 = vmatprep.subr.msk.mxu1 %vm464_vm0, %v669_v42 }
 0x492   :  { %3429 = vmatpush3.xpose.msk.msra.mxu1 %vm464_vm0, %v669_v42 }
 0x493   :  { %3440 = vmatprep.subr.msk.mxu1 %vm464_vm0, %v890_v50 }
 0x495   :  { %3431 = vmatmul.mubr.msk.f32.vlgmr.msra.gmra.mxu1 %vm464_vm0, %v667_v49 }
 0x496   :  { %3441 = vmatpush3.xpose.msk.msra.mxu1 %vm464_vm0, %v890_v50  ;;  %3444 = vmatprep.mubr.msk.f32.mxu1 %vm464_vm0, %v884_v51 }
 0x497   :  { %3442 = vmatprep.subr.msk.mxu1 %vm464_vm0, %v888_v52 }
 0x49a   :  { %3443 = vmatpush3.xpose.msk.msra.mxu1 %vm464_vm0, %v888_v52 }
 0x49d   :  { %3445 = vmatmul.mubr.msk.f32.vlgmr.msra.gmra.mxu1 %vm464_vm0, %v886_v53 }
 0x54d   :  { %v3425_v54 = vpop.f32.mrf.mxu1 }
 0x54e   :  { %663 = vst.msk [vmem:[#allocation2 + $0x8] sm:$0xff] %vm464_vm0, %v3425_v54 }
 0x54f   :  { %v653_v55 = vpop.f32.mrf.mxu1 }
 0x550   :  { %662 = vst.msk [vmem:[#allocation2] sm:$0xff] %vm464_vm0, %v653_v55 }
 0x555   :  { %v3432_v57 = vpop.f32.mrf.mxu1 }
 0x556   :  { %v752_v3 = vadd.f32 %v3432_v57, %v4209_v16 }
 0x557   :  { %v746_v58 = vpop.f32.mrf.mxu1 }
 0x558   :  { %v758_v4 = vsel %vm552_vm1, %v752_v3, -inf  ;;  %v747_v27 = vadd.f32 %v746_v58, %v4211_v18 }
 0x55a   :  { %v755_v28 = vsel %vm552_vm1, %v747_v27, -inf }
 0x55d   :  { %v3446_v59 = vpop.f32.mrf.mxu1 }
 0x55e   :  { %v971_v60 = vadd.f32 %v3446_v59, %v4209_v16 }
 0x55f   :  { %v965_v61 = vpop.f32.mrf.mxu1 }
 0x560   :  { %v966_v62 = vadd.f32 %v965_v61, %v4211_v18  ;;  %v977_v63 = vsel %vm552_vm1, %v971_v60, -inf }
 0x561   :  { %978 = vmax.xlane.f32.xlu1 %v977_v63 }
 0x562   :  { %v974_v2 = vsel %vm552_vm1, %v966_v62, -inf }
 0x563   :  { %975 = vmax.xlane.f32.xlu0 %v974_v2 }
 0x572   :  { %1002 = vrot.lane.b32.xlu1 %v4194_v14, %s4003_s0 }
 0x576   :  { %1106 = vrot.lane.b32.xlu1 %v4187_v12, %s3992_s26 }
 0x57a   :  { %1104 = vrot.lane.b32.xlu1 %v4181_v10, %s3992_s26 }
 0x57e   :  { %1102 = vrot.lane.b32.xlu1 %v4205_v15, %s3992_s26 }
 0x5a2   :  { %759 = vmax.xlane.f32.xlu1 %v758_v4 }
 0x5ea   :  { %v979_v5 = vpop.xlane.xlu1 %978 }
 0x5eb   :  { %v981_v6 = vsub.f32 %v971_v60, %v979_v5 }
 0x5ec   :  { %v976_v7 = vpop.xlane.xlu0 %975 }
 0x5ed   :  { %v984_v8 = vmul.f32 1.442695, %v981_v6  ;;  %v980_v9 = vsub.f32 %v966_v62, %v976_v7 }
 0x5ee   :  { %v1003_v20 = vpop.permute.xlu1 %1002 }
 0x5ef   :  { %3664 = vpow2.f32 %v984_v8  ;;  %v982_v17 = vmul.f32 1.442695, %v980_v9 }
 0x5f1   :  { %3666 = vpow2.f32 %v982_v17 }
 0x5f2   :  { %v1107_v21 = vpop.permute.xlu1 %1106 }
 0x5f6   :  { %v1105_v22 = vpop.permute.xlu1 %1104 }
 0x5fa   :  { %v1103_v23 = vpop.permute.xlu1 %1102 }
 0x5fc   :  { %v3665_v12 = vpop.eup %3664 }
 0x5fd   :  { %v989_v19 = vsel %vm552_vm1, %v3665_v12, 0.0 }
 0x5fe   :  { %v3667_v10 = vpop.eup %3666  ;;  %990 = vadd.xlane.f32.xlu0 %v989_v19 }
 0x5ff   :  { %v986_v15 = vsel %vm552_vm1, %v3667_v10, 0.0 }
 0x602   :  { %987 = vadd.xlane.f32.xlu0 %v986_v15 }
 0x618   :  { %1004 = vrot.lane.b32.xlu0 %v4189_v13, %s4003_s0 }
 0x61c   :  { %1100 = vrot.lane.b32.xlu0 %v4183_v11, %s3992_s26 }
 0x62b   :  { %v760_v24 = vpop.xlane.xlu1 %759 }
 0x62c   :  { %v762_v25 = vsub.f32 %v752_v3, %v760_v24 }
 0x62e   :  { %v765_v26 = vmul.f32 1.442695, %v762_v25 }
 0x630   :  { %3668 = vpow2.f32 %v765_v26 }
 0x63b   :  { %756 = vmax.xlane.f32.xlu0 %v755_v28 }
 0x63d   :  { %v4273_v29 = vpop.eup %3668 }
 0x63e   :  { %v770_v30 = vsel %vm552_vm1, %v4273_v29, 0.0 }
 0x63f   :  { %771 = vadd.xlane.f32.xlu1 %v770_v30 }
 0x687   :  { %v991_v31 = vpop.xlane.xlu0 %990 }
 0x688   :  { %3670 = vrcp.f32 %v991_v31 }
 0x68b   :  { %v988_v11 = vpop.xlane.xlu0 %987 }
 0x68c   :  { %3672 = vrcp.f32 %v988_v11 }
 0x68f   :  { %v1005_v32 = vpop.permute.xlu0 %1004 }
 0x690   :  { %3447 = vmatprep.subr.mxu1 %v1005_v32 }
 0x691   :  { %3448 = vmatpush3.msra.mxu1 %v1005_v32 }
 0x692   :  { %3449 = vmatprep.subr.mxu1 %v1003_v20 }
 0x693   :  { %3450 = vmatpush3.msra.mxu1 %v1003_v20  ;;  %v1101_v43 = vpop.permute.xlu0 %1100 }
 0x694   :  { %3454 = vmatprep.subr.msk.mxu1 %vm464_vm0, %v1107_v21 }
 0x695   :  { %v3671_v33 = vpop.eup %3670 }
 0x696   :  { %v995_v34 = vmul.f32 %v3671_v33, %v991_v31 }
 0x698   :  { %v997_v36 = vsub.f32 2.0, %v995_v34  ;;  %v462_v34 = vld [vmem:[#allocation12 + $0x78] sm:$0xff] }
 0x699   :  { %v3673_v35 = vpop.eup %3672 }
 0x69a   :  { %v994_v37 = vmul.f32 %v3673_v35, %v988_v11  ;;  %v999_v39 = vmul.f32 %v3671_v33, %v997_v36  ;;  %v460_v36 = vld [vmem:[#allocation12 + $0x68] sm:$0xff] }
 0x69c   :  { %v996_v38 = vsub.f32 2.0, %v994_v37  ;;  %v1001_v42 = vmul.f32 %v3665_v12, %v999_v39  ;;  %v459_v37 = vld [vmem:[#allocation12 + $0x60] sm:$0xff]  ;;  %v457_v39 = vld [vmem:[#allocation12 + $0x50] sm:$0xff] }
 0x69e   :  { %v998_v40 = vmul.f32 %v3673_v35, %v996_v38  ;;  %v461_v35 = vld [vmem:[#allocation12 + $0x70] sm:$0xff]  ;;  %v458_v38 = vld [vmem:[#allocation12 + $0x58] sm:$0xff] }
 0x6a0   :  { %v1000_v41 = vmul.f32 %v3667_v10, %v998_v40  ;;  %v456_v40 = vld [vmem:[#allocation12 + $0x48] sm:$0xff] }
 0x6a2   :  { %3451 = vmatprep.mubr.msk.f32.mxu1 %vm552_vm1, %v1000_v41  ;;  %v455_v41 = vld [vmem:[#allocation12 + $0x40] sm:$0xff] }
 0x6a3   :  { %3452 = vmatmul.mubr.msk.f32.vlgmr.msra.gmra.mxu1 %vm552_vm1, %v1001_v42  ;;  %v454_v42 = vld [vmem:[#allocation12 + $0x38] sm:$0xff] }
 0x6a4   :  { %3455 = vmatpush3.xpose.msk.msra.mxu1 %vm464_vm0, %v1107_v21  ;;  %3458 = vmatprep.mubr.msk.f32.mxu1 %vm464_vm0, %v1101_v43  ;;  %v453_v43 = vld [vmem:[#allocation12 + $0x30] sm:$0xff] }
 0x6a5   :  { %3456 = vmatprep.subr.msk.mxu1 %vm464_vm0, %v1105_v22 }
 0x6a8   :  { %3457 = vmatpush3.xpose.msk.msra.mxu1 %vm464_vm0, %v1105_v22 }
 0x6ab   :  { %3459 = vmatmul.mubr.msk.f32.vlgmr.msra.gmra.mxu1 %vm464_vm0, %v1103_v23 }
 0x6c4   :  { %v757_v44 = vpop.xlane.xlu0 %756 }
 0x6c5   :  { %v761_v45 = vsub.f32 %v747_v27, %v757_v44 }
 0x6c7   :  { %v763_v46 = vmul.f32 1.442695, %v761_v45  ;;  %v452_v45 = vld [vmem:[#allocation12 + $0x28] sm:$0xff] }
 0x6c8   :  { %v772_v17 = vpop.xlane.xlu1 %771 }
 0x6c9   :  { %3674 = vpow2.f32 %v763_v46 }
 0x6d6   :  { %v3675_v55 = vpop.eup %3674 }
 0x6d7   :  { %v767_v57 = vsel %vm552_vm1, %v3675_v55, 0.0 }
 0x763   :  { %v4285_v47 = vpop.f32.mrf.mxu1 }
 0x765   :  { %v4287_v48 = vpop.f32.mrf.mxu1 }
 0x76b   :  { %v3460_v49 = vpop.f32.mrf.mxu1 }
 0x76c   :  { %v1188_v52 = vadd.f32 %v3460_v49, %v4209_v16  ;;  %v451_v49 = vld [vmem:[#allocation12 + $0x20] sm:$0xff] }
 0x76d   :  { %v1182_v50 = vpop.f32.mrf.mxu1 }
 0x76e   :  { %v1183_v51 = vadd.f32 %v1182_v50, %v4211_v18  ;;  %v1194_v54 = vsel %vm552_vm1, %v1188_v52, -inf  ;;  %v450_v50 = vld [vmem:[#allocation12 + $0x18] sm:$0xff] }
 0x770   :  { %v1191_v53 = vsel %vm552_vm1, %v1183_v51, -inf }
 0x771   :  { %1192 = vmax.xlane.f32.xlu0 %v1191_v53  ;;  %v447_v53 = vld [vmem:[#allocation12] sm:$0xff] }
 0x775   :  { %1195 = vmax.xlane.f32.xlu0 %v1194_v54 }
 0x779   :  { %768 = vadd.xlane.f32.xlu0 %v767_v57 }
 0x7fa   :  { %v1193_v58 = vpop.xlane.xlu0 %1192 }
 0x7fb   :  { %v1197_v59 = vsub.f32 %v1183_v51, %v1193_v58  ;;  %v449_v51 = vld [vmem:[#allocation12 + $0x10] sm:$0xff] }
 0x7fd   :  { %v1199_v60 = vmul.f32 1.442695, %v1197_v59 }
 0x7fe   :  { %v1196_v61 = vpop.xlane.xlu0 %1195 }
 0x7ff   :  { %3676 = vpow2.f32 %v1199_v60  ;;  %v1198_v62 = vsub.f32 %v1188_v52, %v1196_v61  ;;  %v448_v52 = vld [vmem:[#allocation12 + $0x8] sm:$0xff] }
 0x801   :  { %v1201_v63 = vmul.f32 1.442695, %v1198_v62 }
 0x802   :  { %v769_v18 = vpop.xlane.xlu0 %768 }
 0x803   :  { %3678 = vpow2.f32 %v1201_v63  ;;  %v3136_v63 = vld [vmem:[%s4542_s9] ss:$0 sm:$0xff] }
 0x804   :  { %3680 = vrcp.f32 %v769_v18 }
 0x805   :  { %3682 = vrcp.f32 %v772_v17 }
 0x80c   :  { %v3677_v16 = vpop.eup %3676 }
 0x80d   :  { %v1203_v2 = vsel %vm552_vm1, %v3677_v16, 0.0 }
 0x80e   :  { %1204 = vadd.xlane.f32.xlu0 %v1203_v2 }
 0x810   :  { %v3679_v3 = vpop.eup %3678 }
 0x811   :  { %v3681_v4 = vpop.eup %3680  ;;  %v1206_v5 = vsel %vm552_vm1, %v3679_v3, 0.0 }
 0x812   :  { %v775_v6 = vmul.f32 %v3681_v4, %v769_v18  ;;  %1207 = vadd.xlane.f32.xlu1 %v1206_v5  ;;  %v3683_v12 = vpop.eup %3682 }
 0x813   :  { %v776_v19 = vmul.f32 %v3683_v12, %v772_v17  ;;  %v1553_v17 = vld [vmem:[#allocation15 + $0xe8] sm:$0xff] }
 0x814   :  { %v777_v7 = vsub.f32 2.0, %v775_v6  ;;  %v1448_v6 = vld [vmem:[#allocation14 + $0x78] sm:$0xff] }
 0x815   :  { %v778_v15 = vsub.f32 2.0, %v776_v19  ;;  %3503 = vmatprep.subr.mxu1 %v1448_v6 }
 0x816   :  { %v779_v8 = vmul.f32 %v3681_v4, %v777_v7  ;;  %v1447_v7 = vld [vmem:[#allocation14 + $0x70] sm:$0xff]  ;;  %3504 = vmatpush3.msra.mxu1 %v1448_v6 }
 0x817   :  { %v780_v22 = vmul.f32 %v3683_v12, %v778_v15  ;;  %v1446_v12 = vld [vmem:[#allocation14 + $0x68] sm:$0xff]  ;;  %3505 = vmatprep.subr.mxu1 %v1447_v7 }
 0x818   :  { %v781_v9 = vmul.f32 %v3675_v55, %v779_v8  ;;  %v1555_v8 = vld [vmem:[#allocation15 + $0xf8] sm:$0xff]  ;;  %3506 = vmatpush3.msra.mxu1 %v1447_v7 }
 0x819   :  { %v782_v24 = vmul.f32 %v4273_v29, %v780_v22  ;;  %3507 = vmatprep.subr.mxu1 %v1446_v12 }
 0x81a   :  { %3437 = vmatprep.mubr.msk.f32.mxu0 %vm552_vm1, %v781_v9  ;;  %v1554_v9 = vld [vmem:[#allocation15 + $0xf0] sm:$0xff]  ;;  %3508 = vmatpush3.msra.mxu1 %v1446_v12 }
 0x823   :  { %785 = vrot.lane.b32.xlu1 %v4194_v14, %s4002_s4 }
 0x824   :  { %787 = vrot.lane.b32.xlu0 %v4189_v13, %s4002_s4 }
 0x827   :  { %1221 = vrot.lane.b32.xlu1 %v4189_v13, %s3992_s26 }
 0x82b   :  { %1219 = vrot.lane.b32.xlu1 %v4194_v14, %s3992_s26 }
 0x897   :  { %v1205_v10 = vpop.xlane.xlu0 %1204 }
 0x898   :  { %3684 = vrcp.f32 %v1205_v10 }
 0x89b   :  { %v1208_v20 = vpop.xlane.xlu1 %1207  ;;  %v788_v21 = vpop.permute.xlu0 %787 }
 0x89c   :  { %3686 = vrcp.f32 %v1208_v20  ;;  %3433 = vmatprep.subr.mxu0 %v788_v21 }
 0x89d   :  { %3434 = vmatpush3.msra.mxu0 %v788_v21 }
 0x89f   :  { %v786_v23 = vpop.permute.xlu1 %785 }
 0x8a0   :  { %3435 = vmatprep.subr.mxu0 %v786_v23 }
 0x8a1   :  { %3436 = vmatpush3.msra.mxu0 %v786_v23 }
 0x8a2   :  { %3438 = vmatmul.mubr.msk.f32.vlgmr.msra.gmra.mxu0 %vm552_vm1, %v782_v24  ;;  %v1445_v24 = vld [vmem:[#allocation14 + $0x60] sm:$0xff] }
 0x8a3   :  { %v1222_v13 = vpop.permute.xlu1 %1221  ;;  %3509 = vmatprep.subr.mxu1 %v1445_v24 }
 0x8a4   :  { %3461 = vmatprep.subr.mxu0 %v1222_v13  ;;  %3510 = vmatpush3.msra.mxu1 %v1445_v24 }
 0x8a5   :  { %v3685_v14 = vpop.eup %3684  ;;  %3462 = vmatpush3.msra.mxu0 %v1222_v13  ;;  %v1551_v13 = vld [vmem:[#allocation15 + $0xd8] sm:$0xff] }
 0x8a6   :  { %v1211_v25 = vmul.f32 %v3685_v14, %v1205_v10 }
 0x8a7   :  { %v1220_v26 = vpop.permute.xlu1 %1219 }
 0x8a8   :  { %v1213_v27 = vsub.f32 2.0, %v1211_v25  ;;  %3463 = vmatprep.subr.mxu0 %v1220_v26  ;;  %v1444_v25 = vld [vmem:[#allocation14 + $0x58] sm:$0xff] }
 0x8a9   :  { %v3687_v28 = vpop.eup %3686  ;;  %3464 = vmatpush3.msra.mxu0 %v1220_v26  ;;  %v1549_v26 = vld [vmem:[#allocation15 + $0xc8] sm:$0xff]  ;;  %3511 = vmatprep.subr.mxu1 %v1444_v25 }
 0x8aa   :  { %v1215_v30 = vmul.f32 %v3685_v14, %v1213_v27  ;;  %v1212_v31 = vmul.f32 %v3687_v28, %v1208_v20  ;;  %3468 = vmatprep.subr.mxu0 %v462_v34  ;;  %v1550_v14 = vld [vmem:[#allocation15 + $0xd0] sm:$0xff]  ;;  %v1548_v27 = vld [vmem:[#allocation15 + $0xc0] sm:$0xff]  ;;  %3512 = vmatpush3.msra.mxu1 %v1444_v25 }
 0x8ab   :  { %v4381_v25 = vld [vmem:[#allocation9] sm:$0xff] }
 0x8ac   :  { %v1217_v11 = vmul.f32 %v3677_v16, %v1215_v30  ;;  %v1214_v32 = vsub.f32 2.0, %v1212_v31  ;;  %v1547_v30 = vld [vmem:[#allocation15 + $0xb8] sm:$0xff]  ;;  %v1546_v31 = vld [vmem:[#allocation15 + $0xb0] sm:$0xff] }
 0x8ae   :  { %v1216_v33 = vmul.f32 %v3687_v28, %v1214_v32  ;;  %3465 = vmatprep.mubr.msk.f32.mxu0 %vm552_vm1, %v1217_v11  ;;  %v1443_v28 = vld [vmem:[#allocation14 + $0x50] sm:$0xff]  ;;  %v1442_v11 = vld [vmem:[#allocation14 + $0x48] sm:$0xff] }
 0x8af   :  { %3513 = vmatprep.subr.mxu1 %v1443_v28  ;;  %v1545_v32 = vld [vmem:[#allocation15 + $0xa8] sm:$0xff] }
 0x8b0   :  { %v1218_v29 = vmul.f32 %v3679_v3, %v1216_v33  ;;  %3514 = vmatpush3.msra.mxu1 %v1443_v28  ;;  %v1544_v33 = vld [vmem:[#allocation15 + $0xa0] sm:$0xff] }
 0x8b1   :  { %3515 = vmatprep.subr.mxu1 %v1442_v11 }
 0x8b2   :  { %3466 = vmatmul.mubr.msk.f32.vlgmr.msra.gmra.mxu0 %vm552_vm1, %v1218_v29  ;;  %3516 = vmatpush3.msra.mxu1 %v1442_v11  ;;  %v1441_v29 = vld [vmem:[#allocation14 + $0x40] sm:$0xff] }
 0x8b3   :  { %3469 = vmatpush3.msra.mxu0 %v462_v34  ;;  %v1543_v34 = vld [vmem:[#allocation15 + $0x98] sm:$0xff]  ;;  %3517 = vmatprep.subr.mxu1 %v1441_v29 }
 0x8b4   :  { %3470 = vmatprep.subr.mxu0 %v461_v35  ;;  %3518 = vmatpush3.msra.mxu1 %v1441_v29 }
 0x8b5   :  { %3471 = vmatpush3.msra.mxu0 %v461_v35  ;;  %v1542_v35 = vld [vmem:[#allocation15 + $0x90] sm:$0xff] }
 0x8b6   :  { %3472 = vmatprep.subr.mxu0 %v460_v36 }
 0x8b7   :  { %3473 = vmatpush3.msra.mxu0 %v460_v36  ;;  %v1440_v36 = vld [vmem:[#allocation14 + $0x38] sm:$0xff] }
 0x8b8   :  { %3474 = vmatprep.subr.mxu0 %v459_v37  ;;  %3519 = vmatprep.subr.mxu1 %v1440_v36 }
 0x8b9   :  { %3475 = vmatpush3.msra.mxu0 %v459_v37  ;;  %v1541_v37 = vld [vmem:[#allocation15 + $0x88] sm:$0xff]  ;;  %3520 = vmatpush3.msra.mxu1 %v1440_v36 }
 0x8ba   :  { %3476 = vmatprep.subr.mxu0 %v458_v38 }
 0x8bb   :  { %3477 = vmatpush3.msra.mxu0 %v458_v38  ;;  %v1540_v38 = vld [vmem:[#allocation15 + $0x80] sm:$0xff] }
 0x8bc   :  { %3478 = vmatprep.subr.mxu0 %v457_v39 }
 0x8bd   :  { %3479 = vmatpush3.msra.mxu0 %v457_v39  ;;  %v1439_v39 = vld [vmem:[#allocation14 + $0x30] sm:$0xff] }
 0x8be   :  { %3480 = vmatprep.subr.mxu0 %v456_v40  ;;  %3521 = vmatprep.subr.mxu1 %v1439_v39 }
 0x8bf   :  { %3481 = vmatpush3.msra.mxu0 %v456_v40  ;;  %v1539_v40 = vld [vmem:[#allocation15 + $0x78] sm:$0xff]  ;;  %3522 = vmatpush3.msra.mxu1 %v1439_v39 }
 0x8c0   :  { %3482 = vmatprep.subr.mxu0 %v455_v41 }
 0x8c1   :  { %3483 = vmatpush3.msra.mxu0 %v455_v41  ;;  %v1538_v41 = vld [vmem:[#allocation15 + $0x70] sm:$0xff] }
 0x8c2   :  { %3484 = vmatprep.subr.mxu0 %v454_v42 }
 0x8c3   :  { %3485 = vmatpush3.msra.mxu0 %v454_v42  ;;  %v1438_v42 = vld [vmem:[#allocation14 + $0x28] sm:$0xff] }
 0x8c4   :  { %3486 = vmatprep.subr.mxu0 %v453_v43  ;;  %3523 = vmatprep.subr.mxu1 %v1438_v42 }
 0x8c5   :  { %3487 = vmatpush3.msra.mxu0 %v453_v43  ;;  %v1537_v43 = vld [vmem:[#allocation15 + $0x68] sm:$0xff]  ;;  %3524 = vmatpush3.msra.mxu1 %v1438_v42 }
 0x8c6   :  { %3488 = vmatprep.subr.mxu0 %v452_v45 }
 0x8c7   :  { %3489 = vmatpush3.msra.mxu0 %v452_v45  ;;  %v1437_v45 = vld [vmem:[#allocation14 + $0x20] sm:$0xff] }
 0x8c8   :  { %3490 = vmatprep.subr.mxu0 %v451_v49  ;;  %3525 = vmatprep.subr.mxu1 %v1437_v45 }
 0x8c9   :  { %3491 = vmatpush3.msra.mxu0 %v451_v49  ;;  %v1534_v49 = vld [vmem:[#allocation15 + $0x50] sm:$0xff]  ;;  %3526 = vmatpush3.msra.mxu1 %v1437_v45 }
 0x8ca   :  { %3492 = vmatprep.subr.mxu0 %v450_v50 }
 0x8cb   :  { %3493 = vmatpush3.msra.mxu0 %v450_v50  ;;  %v1436_v50 = vld [vmem:[#allocation14 + $0x18] sm:$0xff] }
 0x8cc   :  { %3494 = vmatprep.subr.mxu0 %v449_v51  ;;  %3527 = vmatprep.subr.mxu1 %v1436_v50 }
 0x8cd   :  { %3495 = vmatpush3.msra.mxu0 %v449_v51  ;;  %v1533_v51 = vld [vmem:[#allocation15 + $0x48] sm:$0xff]  ;;  %3528 = vmatpush3.msra.mxu1 %v1436_v50 }
 0x8ce   :  { %3496 = vmatprep.subr.mxu0 %v448_v52 }
 0x8cf   :  { %3497 = vmatpush3.msra.mxu0 %v448_v52  ;;  %v1532_v52 = vld [vmem:[#allocation15 + $0x40] sm:$0xff] }
 0x8d0   :  { %3498 = vmatprep.subr.mxu0 %v447_v53 }
 0x8d1   :  { %3499 = vmatpush3.msra.mxu0 %v447_v53  ;;  %v1435_v53 = vld [vmem:[#allocation14 + $0x10] sm:$0xff] }
 0x8d2   :  { %1556 = vmatprep.subr.mxu0 %v1555_v8  ;;  %3529 = vmatprep.subr.mxu1 %v1435_v53 }
 0x8d3   :  { %3530 = vmatpush3.msra.mxu1 %v1435_v53 }
 0x962   :  { %v3439_v44 = vpop.f32.mrf.mxu0 }
 0x963   :  { %876 = vrot.lane.b32.xlu1 %v3439_v44, %s3992_s26  ;;  %v1536_v44 = vld [vmem:[#allocation15 + $0x60] sm:$0xff] }
 0x964   :  { %v863_v46 = vpop.f32.mrf.mxu0 }
 0x965   :  { %874 = vrot.lane.b32.xlu0 %v863_v46, %s3992_s26  ;;  %v1535_v46 = vld [vmem:[#allocation15 + $0x58] sm:$0xff] }
 0x967   :  { %1093 = vrot.lane.b32.xlu1 %v4285_v47, %s4003_s0 }
 0x969   :  { %1091 = vrot.lane.b32.xlu0 %v4287_v48, %s4003_s0 }
 0x972   :  { %v3467_v54 = vpop.f32.mrf.mxu0 }
 0x973   :  { %1310 = vrot.lane.b32.xlu1 %v3467_v54, %s4002_s4  ;;  %v1531_v54 = vld [vmem:[#allocation15 + $0x38] sm:$0xff] }
 0x974   :  { %v1297_v47 = vpop.f32.mrf.mxu0 }
 0x975   :  { %1308 = vrot.lane.b32.xlu0 %v1297_v47, %s4002_s4  ;;  %v1530_v47 = vld [vmem:[#allocation15 + $0x30] sm:$0xff] }
 0x9d5   :  { %v877_v55 = vpop.permute.xlu1 %876 }
 0x9d6   :  { %882 = vst.msk [vmem:[#allocation2 + $0x8] sm:$0xff] %vm880_vm2, %v877_v55  ;;  %v1434_v55 = vld [vmem:[#allocation14 + $0x8] sm:$0xff] }
 0x9d7   :  { %v875_v48 = vpop.permute.xlu0 %874  ;;  %3531 = vmatprep.subr.mxu1 %v1434_v55 }
 0x9d8   :  { %881 = vst.msk [vmem:[#allocation2] sm:$0xff] %vm880_vm2, %v875_v48  ;;  %v1529_v48 = vld [vmem:[#allocation15 + $0x28] sm:$0xff]  ;;  %3532 = vmatpush3.msra.mxu1 %v1434_v55 }
 0x9d9   :  { %v1094_v57 = vpop.permute.xlu1 %1093 }
 0x9da   :  { %1099 = vst.msk [vmem:[#allocation2 + $0x8] sm:$0xff] %vm1097_vm3, %v1094_v57  ;;  %v1528_v57 = vld [vmem:[#allocation15 + $0x20] sm:$0xff] }
 0x9db   :  { %v1092_v58 = vpop.permute.xlu0 %1091 }
 0x9dc   :  { %1098 = vst.msk [vmem:[#allocation2] sm:$0xff] %vm1097_vm3, %v1092_v58  ;;  %v1433_v58 = vld [vmem:[#allocation14] sm:$0xff] }
 0x9dd   :  { %3533 = vmatprep.subr.mxu1 %v1433_v58 }
 0x9de   :  { %3534 = vmatpush3.msra.mxu1 %v1433_v58 }
 0x9e5   :  { %v1311_v59 = vpop.permute.xlu1 %1310 }
 0x9e6   :  { %1316 = vst.msk [vmem:[#allocation2 + $0x8] sm:$0xff] %vm1314_vm4, %v1311_v59  ;;  %v1527_v59 = vld [vmem:[#allocation15 + $0x18] sm:$0xff] }
 0x9e7   :  { %v1309_v60 = vpop.permute.xlu0 %1308 }
 0x9e8   :  { %1315 = vst.msk [vmem:[#allocation2] sm:$0xff] %vm1314_vm4, %v1309_v60  ;;  %v1526_v60 = vld [vmem:[#allocation15 + $0x10] sm:$0xff] }
 0x9ed   :  { %v1318_v62 = vld [vmem:[#allocation2 + $0x8] sm:$0xff] }
 0x9ef   :  { %v1317_v61 = vld [vmem:[#allocation2] sm:$0xff] }
 0x9f0   :  { %3500 = vmatprep.mubr.f32.mxu0 %v1317_v61  ;;  %v1525_v61 = vld [vmem:[#allocation15 + $0x8] sm:$0xff] }
 0x9f1   :  { %3501 = vmatmul.mubr.f32.vlgmr.msra.gmra.mxu0 %v1318_v62  ;;  %v1524_v62 = vld [vmem:[#allocation15] sm:$0xff] }
 0x9f2   :  { %1620 = vmatprep.mubr.f32.mxu0 %v4001_v56  ;;  %1557 = vmatpush1.msra.mxu0 %v1554_v9 }
 0x9f3   :  { %1558 = vmatprep.subr.mxu0 %v1553_v17  ;;  %v3137_v17 = vld [vmem:[%s4538_s5] ss:$0 sm:$0xff] }
 0xab1   :  { %v3502_v18 = vpop.f32.mrf.mxu0 }
 0xab2   :  { %v1397_v16 = vadd.f32 %v3502_v18, %v3136_v63  ;;  %v212_v18 = vld [vmem:[#allocation6 + $0x8] sm:$0xff] }
 0xab3   :  { %v1391_v2 = vpop.f32.mrf.mxu0 }
 0xab4   :  { %v4328_v3 = vadd.f32 %v1397_v16, %v4161_v1  ;;  %v1392_v4 = vadd.f32 %v3136_v63, %v1391_v2  ;;  %v1552_v1 = vld [vmem:[#allocation15 + $0xe0] sm:$0xff]  ;;  %v211_v63 = vld [vmem:[#allocation6] sm:$0xff] }
 0xab5   :  { %1559 = vmatpush1.msra.mxu0 %v1552_v1 }
 0xab6   :  { %v4331_v5 = vadd.f32 %v1392_v4, %v4158_v0  ;;  %1405 = vadd.xlane.f32.xlu1 %v4328_v3  ;;  %1560 = vmatprep.subr.mxu0 %v1551_v13  ;;  %v4379_v13 = vld [vmem:[#allocation9 + $0x8] sm:$0xff] }
 0xab7   :  { %1561 = vmatpush1.msra.mxu0 %v1550_v14 }
 0xab8   :  { %1403 = vadd.xlane.f32.xlu0 %v4331_v5  ;;  %1562 = vmatprep.subr.mxu0 %v1549_v26 }
 0xab9   :  { %1563 = vmatpush1.msra.mxu0 %v1548_v27 }
 0xaba   :  { %1564 = vmatprep.subr.mxu0 %v1547_v30 }
 0xabb   :  { %1565 = vmatpush1.msra.mxu0 %v1546_v31 }
 0xabc   :  { %1566 = vmatprep.subr.mxu0 %v1545_v32 }
 0xabd   :  { %1567 = vmatpush1.msra.mxu0 %v1544_v33 }
 0xabe   :  { %1568 = vmatprep.subr.mxu0 %v1543_v34 }
 0xabf   :  { %1569 = vmatpush1.msra.mxu0 %v1542_v35 }
 0xac0   :  { %1570 = vmatprep.subr.mxu0 %v1541_v37 }
 0xac1   :  { %1571 = vmatpush1.msra.mxu0 %v1540_v38 }
 0xac2   :  { %1572 = vmatprep.subr.mxu0 %v1539_v40 }
 0xac3   :  { %1573 = vmatpush1.msra.mxu0 %v1538_v41 }
 0xac4   :  { %1574 = vmatprep.subr.mxu0 %v1537_v43 }
 0xac5   :  { %1575 = vmatpush1.msra.mxu0 %v1536_v44 }
 0xac6   :  { %1576 = vmatprep.subr.mxu0 %v1535_v46 }
 0xac7   :  { %1577 = vmatpush1.msra.mxu0 %v1534_v49 }
 0xac8   :  { %1578 = vmatprep.subr.mxu0 %v1533_v51 }
 0xac9   :  { %1579 = vmatpush1.msra.mxu0 %v1532_v52 }
 0xaca   :  { %1580 = vmatprep.subr.mxu0 %v1531_v54 }
 0xacb   :  { %1581 = vmatpush1.msra.mxu0 %v1530_v47 }
 0xacc   :  { %1582 = vmatprep.subr.mxu0 %v1529_v48 }
 0xacd   :  { %1583 = vmatpush1.msra.mxu0 %v1528_v57 }
 0xace   :  { %1584 = vmatprep.subr.mxu0 %v1527_v59 }
 0xacf   :  { %1585 = vmatpush1.msra.mxu0 %v1526_v60 }
 0xad0   :  { %1586 = vmatprep.subr.mxu0 %v1525_v61 }
 0xad1   :  { %1587 = vmatpush1.msra.mxu0 %v1524_v62 }
 0xad2   :  { %1621 = vmatmul.mubr.f32.vlgmr.msra.gmra.mxu0 %v211_v63 }
 0xad3   :  { %1626 = vmatprep.mubr.f32.mxu0 %v4001_v56 }
 0xad6   :  { %1627 = vmatmul.mubr.f32.gmra.mxu0 %v212_v18 }
 0xb3f   :  { %v1406_v0 = vpop.xlane.xlu1 %1405 }
 0xb40   :  { %v1408_v10 = vmul.f32 0.0078125, %v1406_v0 }
 0xb41   :  { %v1404_v19 = vpop.xlane.xlu0 %1403 }
 0xb42   :  { %v1407_v15 = vmul.f32 0.0078125, %v1404_v19  ;;  %v4339_v21 = vsub.f32 %v4328_v3, %v1408_v10 }
 0xb44   :  { %v4336_v20 = vsub.f32 %v4331_v5, %v1407_v15  ;;  %v1412_v23 = vmul.f32 %v4339_v21, %v4339_v21 }
 0xb46   :  { %v1411_v22 = vmul.f32 %v4336_v20, %v4336_v20 }
 0xb48   :  { %1413 = vadd.xlane.f32.xlu0 %v1411_v22 }
 0xb4c   :  { %1415 = vadd.xlane.f32.xlu0 %v1412_v23 }
 0xb92   :  { %v4351_v15 = vpop.f32.mrf.mxu0 }
 0xb94   :  { %v4355_v22 = vpop.f32.mrf.mxu0 }
 0xb96   :  { %v4359_v24 = vpop.f32.mrf.mxu0 }
 0xbd1   :  { %v1414_v16 = vpop.xlane.xlu0 %1413 }
 0xbd2   :  { %v1417_v2 = vmul.f32 0.0078125, %v1414_v16 }
 0xbd4   :  { %v1419_v4 = vadd.f32 1e-05, %v1417_v2 }
 0xbd5   :  { %v1416_v6 = vpop.xlane.xlu0 %1415 }
 0xbd6   :  { %3688 = vrsqrt.f32 %v1419_v4  ;;  %v1418_v7 = vmul.f32 0.0078125, %v1416_v6 }
 0xbd8   :  { %v1420_v8 = vadd.f32 1e-05, %v1418_v7 }
 0xbda   :  { %3690 = vrsqrt.f32 %v1420_v8 }
 0xbe3   :  { %v3689_v9 = vpop.eup %3688 }
 0xbe4   :  { %v1423_v12 = vmul.f32 %v3689_v9, %v4336_v20 }
 0xbe6   :  { %v1431_v1 = vmul.f32 %v3137_v17, %v1423_v12 }
 0xbe7   :  { %v3691_v0 = vpop.eup %3690 }
 0xbe8   :  { %v1424_v19 = vmul.f32 %v3691_v0, %v4339_v21  ;;  %3535 = vmatprep.mubr.f32.mxu1 %v1431_v1  ;;  %v4369_v21 = vpop.f32.mrf.mxu0 }
 0xbea   :  { %v1432_v10 = vmul.f32 %v3137_v17, %v1424_v19 }
 0xbec   :  { %3536 = vmatmul.mubr.f32.vlgmr.msra.gmra.mxu1 %v1432_v10 }
 0xbed   :  { %3542 = vmatprep.mubr.msk.f32.mxu1 %vm464_vm0, %v4351_v15 }
 0xcac   :  { %v4357_v23 = vpop.f32.mrf.mxu1 }
 0xcad   :  { %3538 = vmatprep.subr.msk.mxu1 %vm464_vm0, %v4357_v23 }
 0xcae   :  { %v4363_v20 = vpop.f32.mrf.mxu1  ;;  %3539 = vmatpush3.xpose.msk.msra.mxu1 %vm464_vm0, %v4357_v23 }
 0xcaf   :  { %3540 = vmatprep.subr.msk.mxu1 %vm464_vm0, %v4363_v20 }
 0xcb2   :  { %3541 = vmatpush3.xpose.msk.msra.mxu1 %vm464_vm0, %v4363_v20 }
 0xcb3   :  { %3545 = vmatprep.subr.mxu1 %v4369_v21 }
 0xcb5   :  { %3543 = vmatmul.mubr.msk.f32.vlgmr.msra.gmra.mxu1 %vm464_vm0, %v4359_v24 }
 0xcb6   :  { %3546 = vmatpush3.msra.mxu1 %v4369_v21 }
 0xcb7   :  { %3547 = vmatprep.subr.mxu1 %v4355_v22 }
 0xcb8   :  { %3548 = vmatpush3.msra.mxu1 %v4355_v22 }
 0xd75   :  { %v3544_v14 = vpop.f32.mrf.mxu1 }
 0xd76   :  { %v1736_v26 = vadd.f32 %v3544_v14, %v4379_v13 }
 0xd77   :  { %v1730_v27 = vpop.f32.mrf.mxu1 }
 0xd78   :  { %v1731_v28 = vadd.f32 %v1730_v27, %v4381_v25  ;;  %v1742_v30 = vsel %vm552_vm1, %v1736_v26, -inf }
 0xd79   :  { %1743 = vmax.xlane.f32.xlu1 %v1742_v30 }
 0xd7a   :  { %v1739_v31 = vsel %vm552_vm1, %v1731_v28, -inf }
 0xd7b   :  { %1740 = vmax.xlane.f32.xlu0 %v1739_v31 }
 0xe02   :  { %v1744_v11 = vpop.xlane.xlu1 %1743 }
 0xe03   :  { %v1746_v32 = vsub.f32 %v1736_v26, %v1744_v11 }
 0xe04   :  { %v1741_v33 = vpop.xlane.xlu0 %1740 }
 0xe05   :  { %v1749_v29 = vmul.f32 1.442695, %v1746_v32  ;;  %v1745_v34 = vsub.f32 %v1731_v28, %v1741_v33 }
 0xe07   :  { %3692 = vpow2.f32 %v1749_v29  ;;  %v1747_v35 = vmul.f32 1.442695, %v1745_v34 }
 0xe09   :  { %3694 = vpow2.f32 %v1747_v35 }
 0xe14   :  { %v3693_v36 = vpop.eup %3692 }
 0xe15   :  { %v1754_v37 = vsel %vm552_vm1, %v3693_v36, 0.0 }
 0xe16   :  { %v3695_v38 = vpop.eup %3694  ;;  %1755 = vadd.xlane.f32.xlu1 %v1754_v37 }
 0xe17   :  { %v1751_v39 = vsel %vm552_vm1, %v3695_v38, 0.0 }
 0xe18   :  { %1752 = vadd.xlane.f32.xlu0 %v1751_v39 }
 0xe27   :  { %1854 = vrot.lane.b32.xlu1 %v4363_v20, %s4002_s4 }
 0xe2b   :  { %1850 = vrot.lane.b32.xlu1 %v4351_v15, %s4002_s4 }
 0xe2e   :  { %1856 = vrot.lane.b32.xlu0 %v4357_v23, %s4002_s4 }
 0xe2f   :  { %1852 = vrot.lane.b32.xlu1 %v4359_v24, %s4002_s4 }
 0xe9f   :  { %v1756_v40 = vpop.xlane.xlu1 %1755 }
 0xea0   :  { %3696 = vrcp.f32 %v1756_v40 }
 0xea1   :  { %v1753_v41 = vpop.xlane.xlu0 %1752 }
 0xea2   :  { %3698 = vrcp.f32 %v1753_v41 }
 0xea3   :  { %v1855_v52 = vpop.permute.xlu1 %1854 }
 0xea5   :  { %v1857_v42 = vpop.permute.xlu0 %1856 }
 0xea6   :  { %3552 = vmatprep.subr.msk.mxu1 %vm464_vm0, %v1857_v42 }
 0xea7   :  { %v1851_v55 = vpop.permute.xlu1 %1850 }
 0xeab   :  { %v1853_v48 = vpop.permute.xlu1 %1852 }
 0xead   :  { %v3697_v43 = vpop.eup %3696 }
 0xeae   :  { %v1760_v44 = vmul.f32 %v3697_v43, %v1756_v40 }
 0xeaf   :  { %v3699_v45 = vpop.eup %3698 }
 0xeb0   :  { %v1762_v46 = vsub.f32 2.0, %v1760_v44  ;;  %v1759_v49 = vmul.f32 %v3699_v45, %v1753_v41 }
 0xeb2   :  { %v1761_v50 = vsub.f32 2.0, %v1759_v49  ;;  %v1764_v51 = vmul.f32 %v3697_v43, %v1762_v46 }
 0xeb4   :  { %v1763_v53 = vmul.f32 %v3699_v45, %v1761_v50  ;;  %v1766_v47 = vmul.f32 %v3693_v36, %v1764_v51 }
 0xeb6   :  { %v1765_v54 = vmul.f32 %v3695_v38, %v1763_v53 }
 0xeb8   :  { %3549 = vmatprep.mubr.msk.f32.mxu1 %vm552_vm1, %v1765_v54 }
 0xeb9   :  { %3550 = vmatmul.mubr.msk.f32.vlgmr.msra.gmra.mxu1 %vm552_vm1, %v1766_v47 }
 0xeba   :  { %3553 = vmatpush3.xpose.msk.msra.mxu1 %vm464_vm0, %v1857_v42  ;;  %3556 = vmatprep.mubr.msk.f32.mxu1 %vm464_vm0, %v1851_v55 }
 0xebb   :  { %3554 = vmatprep.subr.msk.mxu1 %vm464_vm0, %v1855_v52 }
 0xebe   :  { %3555 = vmatpush3.xpose.msk.msra.mxu1 %vm464_vm0, %v1855_v52 }
 0xec1   :  { %3557 = vmatmul.mubr.msk.f32.vlgmr.msra.gmra.mxu1 %vm464_vm0, %v1853_v48 }
 0xf79   :  { %v3551_v57 = vpop.f32.mrf.mxu1 }
 0xf7a   :  { %1849 = vst.msk [vmem:[#allocation2 + $0x8] sm:$0xff] %vm464_vm0, %v3551_v57 }
 0xf7b   :  { %v1839_v58 = vpop.f32.mrf.mxu1 }
 0xf7c   :  { %1848 = vst.msk [vmem:[#allocation2] sm:$0xff] %vm464_vm0, %v1839_v58 }
 0xf81   :  { %v3558_v59 = vpop.f32.mrf.mxu1 }
 0xf82   :  { %v1938_v60 = vadd.f32 %v3558_v59, %v4379_v13 }
 0xf83   :  { %v1932_v61 = vpop.f32.mrf.mxu1 }
 0xf84   :  { %v1933_v62 = vadd.f32 %v1932_v61, %v4381_v25  ;;  %v1944_v63 = vsel %vm552_vm1, %v1938_v60, -inf }
 0xf85   :  { %1945 = vmax.xlane.f32.xlu1 %v1944_v63 }
 0xf86   :  { %v1941_v18 = vsel %vm552_vm1, %v1933_v62, -inf }
 0xf87   :  { %1942 = vmax.xlane.f32.xlu0 %v1941_v18 }
 0xf96   :  { %1971 = vrot.lane.b32.xlu1 %v4355_v22, %s4002_s4 }
 0xf9a   :  { %2074 = vrot.lane.b32.xlu1 %v4357_v23, %s4003_s0 }
 0xf9e   :  { %2072 = vrot.lane.b32.xlu1 %v4363_v20, %s4003_s0 }
 0xfa2   :  { %2070 = vrot.lane.b32.xlu1 %v4359_v24, %s4003_s0 }
0x100e   :  { %v1946_v16 = vpop.xlane.xlu1 %1945 }
0x100f   :  { %v1948_v2 = vsub.f32 %v1938_v60, %v1946_v16 }
0x1010   :  { %v1943_v4 = vpop.xlane.xlu0 %1942 }
0x1011   :  { %v1951_v6 = vmul.f32 1.442695, %v1948_v2  ;;  %v1947_v7 = vsub.f32 %v1933_v62, %v1943_v4 }
0x1012   :  { %v1972_v10 = vpop.permute.xlu1 %1971 }
0x1013   :  { %3700 = vpow2.f32 %v1951_v6  ;;  %v1949_v8 = vmul.f32 1.442695, %v1947_v7 }
0x1015   :  { %3702 = vpow2.f32 %v1949_v8 }
0x1016   :  { %v2075_v26 = vpop.permute.xlu1 %2074 }
0x101a   :  { %v2073_v37 = vpop.permute.xlu1 %2072 }
0x101e   :  { %v2071_v38 = vpop.permute.xlu1 %2070 }
0x1020   :  { %v3701_v9 = vpop.eup %3700 }
0x1021   :  { %v1956_v17 = vsel %vm552_vm1, %v3701_v9, 0.0 }
0x1022   :  { %v3703_v12 = vpop.eup %3702  ;;  %1957 = vadd.xlane.f32.xlu0 %v1956_v17 }
0x1023   :  { %v1953_v1 = vsel %vm552_vm1, %v3703_v12, 0.0 }
0x1026   :  { %1954 = vadd.xlane.f32.xlu0 %v1953_v1 }
0x103c   :  { %1973 = vrot.lane.b32.xlu0 %v4369_v21, %s4002_s4 }
0x1040   :  { %2068 = vrot.lane.b32.xlu0 %v4351_v15, %s4003_s0 }
0x10ab   :  { %v1958_v0 = vpop.xlane.xlu0 %1957 }
0x10ac   :  { %3704 = vrcp.f32 %v1958_v0 }
0x10af   :  { %v1955_v19 = vpop.xlane.xlu0 %1954 }
0x10b0   :  { %3706 = vrcp.f32 %v1955_v19 }
0x10b3   :  { %v1974_v14 = vpop.permute.xlu0 %1973 }
0x10b4   :  { %3559 = vmatprep.subr.mxu1 %v1974_v14 }
0x10b5   :  { %3560 = vmatpush3.msra.mxu1 %v1974_v14 }
0x10b6   :  { %3561 = vmatprep.subr.mxu1 %v1972_v10 }
0x10b7   :  { %3562 = vmatpush3.msra.mxu1 %v1972_v10  ;;  %v2069_v36 = vpop.permute.xlu0 %2068 }
0x10b8   :  { %3566 = vmatprep.subr.msk.mxu1 %vm464_vm0, %v2075_v26 }
0x10b9   :  { %v3705_v27 = vpop.eup %3704 }
0x10ba   :  { %v1962_v28 = vmul.f32 %v3705_v27, %v1958_v0 }
0x10bc   :  { %v1964_v31 = vsub.f32 2.0, %v1962_v28 }
0x10bd   :  { %v3707_v30 = vpop.eup %3706 }
0x10be   :  { %v1961_v11 = vmul.f32 %v3707_v30, %v1955_v19  ;;  %v1966_v33 = vmul.f32 %v3705_v27, %v1964_v31 }
0x10c0   :  { %v1963_v32 = vsub.f32 2.0, %v1961_v11  ;;  %v1968_v35 = vmul.f32 %v3701_v9, %v1966_v33 }
0x10c2   :  { %v1965_v29 = vmul.f32 %v3707_v30, %v1963_v32 }
0x10c4   :  { %v1967_v34 = vmul.f32 %v3703_v12, %v1965_v29 }
0x10c6   :  { %3563 = vmatprep.mubr.msk.f32.mxu1 %vm552_vm1, %v1967_v34 }
0x10c7   :  { %3564 = vmatmul.mubr.msk.f32.vlgmr.msra.gmra.mxu1 %vm552_vm1, %v1968_v35 }
0x10c8   :  { %3567 = vmatpush3.xpose.msk.msra.mxu1 %vm464_vm0, %v2075_v26  ;;  %3570 = vmatprep.mubr.msk.f32.mxu1 %vm464_vm0, %v2069_v36 }
0x10c9   :  { %3568 = vmatprep.subr.msk.mxu1 %vm464_vm0, %v2073_v37 }
0x10cc   :  { %3569 = vmatpush3.xpose.msk.msra.mxu1 %vm464_vm0, %v2073_v37 }
0x10cf   :  { %3571 = vmatmul.mubr.msk.f32.vlgmr.msra.gmra.mxu1 %vm464_vm0, %v2071_v38 }
0x1187   :  { %v4433_v39 = vpop.f32.mrf.mxu1 }
0x1189   :  { %v4435_v40 = vpop.f32.mrf.mxu1 }
0x118f   :  { %v3572_v41 = vpop.f32.mrf.mxu1 }
0x1190   :  { %v2156_v42 = vadd.f32 %v3572_v41, %v4379_v13 }
0x1191   :  { %v2150_v43 = vpop.f32.mrf.mxu1 }
0x1192   :  { %v2151_v44 = vadd.f32 %v2150_v43, %v4381_v25  ;;  %v2162_v45 = vsel %vm552_vm1, %v2156_v42, -inf }
0x1193   :  { %2163 = vmax.xlane.f32.xlu1 %v2162_v45 }
0x1194   :  { %v2159_v46 = vsel %vm552_vm1, %v2151_v44, -inf }
0x1195   :  { %2160 = vmax.xlane.f32.xlu0 %v2159_v46 }
0x11a4   :  { %2187 = vrot.lane.b32.xlu1 %v4355_v22, %s4003_s0 }
0x11a8   :  { %2290 = vrot.lane.b32.xlu1 %v4357_v23, %s3992_s26 }
0x11ac   :  { %2288 = vrot.lane.b32.xlu1 %v4363_v20, %s3992_s26 }
0x11b0   :  { %2286 = vrot.lane.b32.xlu1 %v4359_v24, %s3992_s26 }
0x121c   :  { %v2164_v49 = vpop.xlane.xlu1 %2163 }
0x121d   :  { %v2166_v50 = vsub.f32 %v2156_v42, %v2164_v49 }
0x121e   :  { %v2161_v51 = vpop.xlane.xlu0 %2160 }
0x121f   :  { %v2169_v52 = vmul.f32 1.442695, %v2166_v50  ;;  %v2165_v53 = vsub.f32 %v2151_v44, %v2161_v51 }
0x1220   :  { %v2188_v57 = vpop.permute.xlu1 %2187 }
0x1221   :  { %3708 = vpow2.f32 %v2169_v52  ;;  %v2167_v54 = vmul.f32 1.442695, %v2165_v53  ;;  %v1650_v52 = vld [vmem:[#allocation17 + $0x78] sm:$0xff]  ;;  %v1649_v53 = vld [vmem:[#allocation17 + $0x70] sm:$0xff] }
0x1222   :  { %3594 = vmatprep.subr.mxu0 %v1650_v52 }
0x1223   :  { %3710 = vpow2.f32 %v2167_v54  ;;  %3595 = vmatpush3.msra.mxu0 %v1650_v52  ;;  %v1648_v54 = vld [vmem:[#allocation17 + $0x68] sm:$0xff]  ;;  %v2652_v52 = vld [vmem:[#allocation18 + $0x120] sm:$0xff] }
0x1224   :  { %v2291_v59 = vpop.permute.xlu1 %2290  ;;  %3596 = vmatprep.subr.mxu0 %v1649_v53 }
0x1225   :  { %3597 = vmatpush3.msra.mxu0 %v1649_v53  ;;  %v2654_v53 = vld [vmem:[#allocation18 + $0x130] sm:$0xff] }
0x1226   :  { %3598 = vmatprep.subr.mxu0 %v1648_v54 }
0x1227   :  { %3599 = vmatpush3.msra.mxu0 %v1648_v54  ;;  %v2649_v54 = vld [vmem:[#allocation18 + $0x108] sm:$0xff] }
0x1228   :  { %v2289_v8 = vpop.permute.xlu1 %2288 }
0x122c   :  { %v2287_v9 = vpop.permute.xlu1 %2286 }
0x122e   :  { %v3709_v47 = vpop.eup %3708 }
0x122f   :  { %v2174_v55 = vsel %vm552_vm1, %v3709_v47, 0.0 }
0x1230   :  { %v3711_v48 = vpop.eup %3710  ;;  %2175 = vadd.xlane.f32.xlu0 %v2174_v55  ;;  %v1646_v55 = vld [vmem:[#allocation17 + $0x58] sm:$0xff] }
0x1231   :  { %v2171_v23 = vsel %vm552_vm1, %v3711_v48, 0.0 }
0x1234   :  { %2172 = vadd.xlane.f32.xlu0 %v2171_v23  ;;  %v1644_v23 = vld [vmem:[#allocation17 + $0x48] sm:$0xff] }
0x124a   :  { %2189 = vrot.lane.b32.xlu0 %v4369_v21, %s4003_s0 }
0x124e   :  { %2284 = vrot.lane.b32.xlu0 %v4351_v15, %s3992_s26 }
0x12b9   :  { %v2176_v24 = vpop.xlane.xlu0 %2175 }
0x12ba   :  { %3712 = vrcp.f32 %v2176_v24 }
0x12bd   :  { %v2173_v20 = vpop.xlane.xlu0 %2172 }
0x12be   :  { %3714 = vrcp.f32 %v2173_v20 }
0x12c1   :  { %v2190_v58 = vpop.permute.xlu0 %2189 }
0x12c2   :  { %3573 = vmatprep.subr.mxu1 %v2190_v58 }
0x12c3   :  { %3574 = vmatpush3.msra.mxu1 %v2190_v58  ;;  %v1640_v58 = vld [vmem:[#allocation17 + $0x28] sm:$0xff] }
0x12c4   :  { %3575 = vmatprep.subr.mxu1 %v2188_v57 }
0x12c5   :  { %3576 = vmatpush3.msra.mxu1 %v2188_v57  ;;  %v2285_v7 = vpop.permute.xlu0 %2284  ;;  %v1641_v57 = vld [vmem:[#allocation17 + $0x30] sm:$0xff] }
0x12c6   :  { %3580 = vmatprep.subr.msk.mxu1 %vm464_vm0, %v2291_v59 }
0x12c7   :  { %v3713_v60 = vpop.eup %3712 }
0x12c8   :  { %v2180_v61 = vmul.f32 %v3713_v60, %v2176_v24  ;;  %v1643_v24 = vld [vmem:[#allocation17 + $0x40] sm:$0xff] }
0x12ca   :  { %v2182_v63 = vsub.f32 2.0, %v2180_v61  ;;  %v1637_v61 = vld [vmem:[#allocation17 + $0x10] sm:$0xff] }
0x12cb   :  { %v3715_v62 = vpop.eup %3714 }
0x12cc   :  { %v2179_v18 = vmul.f32 %v3715_v62, %v2173_v20  ;;  %v2184_v15 = vmul.f32 %v3713_v60, %v2182_v63  ;;  %v1642_v20 = vld [vmem:[#allocation17 + $0x38] sm:$0xff]  ;;  %v1635_v63 = vld [vmem:[#allocation17] sm:$0xff] }
0x12cd   :  { %v1638_v60 = vld [vmem:[#allocation17 + $0x18] sm:$0xff] }
0x12ce   :  { %v2181_v16 = vsub.f32 2.0, %v2179_v18  ;;  %v2186_v6 = vmul.f32 %v3709_v47, %v2184_v15  ;;  %v1647_v47 = vld [vmem:[#allocation17 + $0x60] sm:$0xff] }
0x12cf   :  { %3600 = vmatprep.subr.mxu0 %v1647_v47 }
0x12d0   :  { %v2183_v2 = vmul.f32 %v3715_v62, %v2181_v16  ;;  %3601 = vmatpush3.msra.mxu0 %v1647_v47  ;;  %v1636_v62 = vld [vmem:[#allocation17 + $0x8] sm:$0xff]  ;;  %v2651_v47 = vld [vmem:[#allocation18 + $0x118] sm:$0xff] }
0x12d1   :  { %3602 = vmatprep.subr.mxu0 %v1646_v55 }
0x12d2   :  { %v2185_v4 = vmul.f32 %v3711_v48, %v2183_v2  ;;  %v1645_v48 = vld [vmem:[#allocation17 + $0x50] sm:$0xff]  ;;  %3603 = vmatpush3.msra.mxu0 %v1646_v55  ;;  %v2648_v55 = vld [vmem:[#allocation18 + $0x100] sm:$0xff] }
0x12d3   :  { %3604 = vmatprep.subr.mxu0 %v1645_v48 }
0x12d4   :  { %3577 = vmatprep.mubr.msk.f32.mxu1 %vm552_vm1, %v2185_v4  ;;  %3605 = vmatpush3.msra.mxu0 %v1645_v48  ;;  %v2650_v48 = vld [vmem:[#allocation18 + $0x110] sm:$0xff] }
0x12d5   :  { %3578 = vmatmul.mubr.msk.f32.vlgmr.msra.gmra.mxu1 %vm552_vm1, %v2186_v6  ;;  %3606 = vmatprep.subr.mxu0 %v1644_v23 }
0x12d6   :  { %3581 = vmatpush3.xpose.msk.msra.mxu1 %vm464_vm0, %v2291_v59  ;;  %3584 = vmatprep.mubr.msk.f32.mxu1 %vm464_vm0, %v2285_v7  ;;  %v1639_v59 = vld [vmem:[#allocation17 + $0x20] sm:$0xff]  ;;  %v3162_v7 = vld [vmem:[%s4546_s13] ss:$0 sm:$0xff] }
0x12d7   :  { %3582 = vmatprep.subr.msk.mxu1 %vm464_vm0, %v2289_v8  ;;  %3607 = vmatpush3.msra.mxu0 %v1644_v23  ;;  %v2645_v23 = vld [vmem:[#allocation18 + $0xe8] sm:$0xff] }
0x12d8   :  { %3608 = vmatprep.subr.mxu0 %v1643_v24 }
0x12d9   :  { %3609 = vmatpush3.msra.mxu0 %v1643_v24  ;;  %v2647_v24 = vld [vmem:[#allocation18 + $0xf8] sm:$0xff] }
0x12da   :  { %3583 = vmatpush3.xpose.msk.msra.mxu1 %vm464_vm0, %v2289_v8  ;;  %3610 = vmatprep.subr.mxu0 %v1642_v20 }
0x12db   :  { %3611 = vmatpush3.msra.mxu0 %v1642_v20  ;;  %v2644_v20 = vld [vmem:[#allocation18 + $0xe0] sm:$0xff] }
0x12dc   :  { %3612 = vmatprep.subr.mxu0 %v1641_v57 }
0x12dd   :  { %3585 = vmatmul.mubr.msk.f32.vlgmr.msra.gmra.mxu1 %vm464_vm0, %v2287_v9  ;;  %3613 = vmatpush3.msra.mxu0 %v1641_v57  ;;  %v2646_v57 = vld [vmem:[#allocation18 + $0xf0] sm:$0xff] }
0x12de   :  { %3614 = vmatprep.subr.mxu0 %v1640_v58 }
0x12df   :  { %3615 = vmatpush3.msra.mxu0 %v1640_v58  ;;  %v2641_v58 = vld [vmem:[#allocation18 + $0xc8] sm:$0xff] }
0x12e0   :  { %3616 = vmatprep.subr.mxu0 %v1639_v59 }
0x12e1   :  { %3617 = vmatpush3.msra.mxu0 %v1639_v59  ;;  %v2643_v59 = vld [vmem:[#allocation18 + $0xd8] sm:$0xff] }
0x12e2   :  { %3618 = vmatprep.subr.mxu0 %v1638_v60 }
0x12e3   :  { %3619 = vmatpush3.msra.mxu0 %v1638_v60  ;;  %v2640_v60 = vld [vmem:[#allocation18 + $0xc0] sm:$0xff] }
0x12e4   :  { %3620 = vmatprep.subr.mxu0 %v1637_v61 }
0x12e5   :  { %3621 = vmatpush3.msra.mxu0 %v1637_v61  ;;  %v2642_v61 = vld [vmem:[#allocation18 + $0xd0] sm:$0xff] }
0x12e6   :  { %3622 = vmatprep.subr.mxu0 %v1636_v62 }
0x12e7   :  { %3623 = vmatpush3.msra.mxu0 %v1636_v62  ;;  %v2637_v62 = vld [vmem:[#allocation18 + $0xa8] sm:$0xff] }
0x12e8   :  { %3624 = vmatprep.subr.mxu0 %v1635_v63 }
0x12e9   :  { %3625 = vmatpush3.msra.mxu0 %v1635_v63  ;;  %v2639_v63 = vld [vmem:[#allocation18 + $0xb8] sm:$0xff] }
0x1395   :  { %v3579_v17 = vpop.f32.mrf.mxu1 }
0x1397   :  { %v2265_v12 = vpop.f32.mrf.mxu1 }
0x139d   :  { %v3586_v1 = vpop.f32.mrf.mxu1 }
0x139e   :  { %v2372_v0 = vadd.f32 %v3586_v1, %v4379_v13 }
0x139f   :  { %v2366_v19 = vpop.f32.mrf.mxu1 }
0x13a0   :  { %v2367_v10 = vadd.f32 %v2366_v19, %v4381_v25  ;;  %v2378_v14 = vsel %vm552_vm1, %v2372_v0, -inf  ;;  %v2677_v19 = vld [vmem:[#allocation18 + $0x1e8] sm:$0xff] }
0x13a1   :  { %2379 = vmax.xlane.f32.xlu1 %v2378_v14  ;;  %v2676_v14 = vld [vmem:[#allocation18 + $0x1e0] sm:$0xff] }
0x13a2   :  { %v2375_v26 = vsel %vm552_vm1, %v2367_v10, -inf }
0x13a3   :  { %2376 = vmax.xlane.f32.xlu0 %v2375_v26  ;;  %v2678_v26 = vld [vmem:[#allocation18 + $0x1f0] sm:$0xff] }
0x13b2   :  { %2403 = vrot.lane.b32.xlu1 %v4355_v22, %s3992_s26 }
0x13b6   :  { %2060 = vrot.lane.b32.xlu1 %v4435_v40, %s3992_s26 }
0x13ba   :  { %2062 = vrot.lane.b32.xlu1 %v4433_v39, %s3992_s26 }
0x13be   :  { %2278 = vrot.lane.b32.xlu1 %v3579_v17, %s4003_s0 }
0x142a   :  { %v2380_v13 = vpop.xlane.xlu1 %2379 }
0x142b   :  { %v2382_v27 = vsub.f32 %v2372_v0, %v2380_v13  ;;  %v2673_v13 = vld [vmem:[#allocation18 + $0x1c8] sm:$0xff] }
0x142c   :  { %v2377_v25 = vpop.xlane.xlu0 %2376 }
0x142d   :  { %v2385_v28 = vmul.f32 1.442695, %v2382_v27  ;;  %v2381_v30 = vsub.f32 %v2367_v10, %v2377_v25  ;;  %v2679_v10 = vld [vmem:[#allocation18 + $0x1f8] sm:$0xff]  ;;  %v2674_v25 = vld [vmem:[#allocation18 + $0x1d0] sm:$0xff] }
0x142e   :  { %v2404_v31 = vpop.permute.xlu1 %2403  ;;  %2779 = vmatprep.subr.mxu0 %v2679_v10  ;;  %v2675_v27 = vld [vmem:[#allocation18 + $0x1d8] sm:$0xff]  ;;  %v2624_v10 = vld [vmem:[#allocation18 + $0x40] sm:$0xff] }
0x142f   :  { %3716 = vpow2.f32 %v2385_v28  ;;  %v2383_v11 = vmul.f32 1.442695, %v2381_v30  ;;  %v2669_v28 = vld [vmem:[#allocation18 + $0x1a8] sm:$0xff]  ;;  %v2668_v30 = vld [vmem:[#allocation18 + $0x1a0] sm:$0xff] }
0x1431   :  { %3718 = vpow2.f32 %v2383_v11  ;;  %v2665_v11 = vld [vmem:[#allocation18 + $0x188] sm:$0xff] }
0x1432   :  { %v2061_v32 = vpop.permute.xlu1 %2060 }
0x1433   :  { %2066 = vst.msk [vmem:[#allocation2] sm:$0xff] %vm880_vm2, %v2061_v32  ;;  %v2667_v32 = vld [vmem:[#allocation18 + $0x198] sm:$0xff] }
0x1436   :  { %v2063_v22 = vpop.permute.xlu1 %2062 }
0x1437   :  { %2067 = vst.msk [vmem:[#allocation2 + $0x8] sm:$0xff] %vm880_vm2, %v2063_v22  ;;  %v2664_v22 = vld [vmem:[#allocation18 + $0x180] sm:$0xff] }
0x143a   :  { %v2279_v33 = vpop.permute.xlu1 %2278 }
0x143b   :  { %2283 = vst.msk [vmem:[#allocation2 + $0x8] sm:$0xff] %vm1097_vm3, %v2279_v33  ;;  %v2666_v33 = vld [vmem:[#allocation18 + $0x190] sm:$0xff] }
0x143c   :  { %v3717_v29 = vpop.eup %3716 }
0x143d   :  { %v2390_v34 = vsel %vm552_vm1, %v3717_v29, 0.0 }
0x143e   :  { %v3719_v35 = vpop.eup %3718  ;;  %2391 = vadd.xlane.f32.xlu0 %v2390_v34  ;;  %v2663_v34 = vld [vmem:[#allocation18 + $0x178] sm:$0xff] }
0x143f   :  { %v2387_v36 = vsel %vm552_vm1, %v3719_v35, 0.0 }
0x1442   :  { %2388 = vadd.xlane.f32.xlu0 %v2387_v36  ;;  %v2662_v36 = vld [vmem:[#allocation18 + $0x170] sm:$0xff] }
0x1458   :  { %2405 = vrot.lane.b32.xlu0 %v4369_v21, %s3992_s26 }
0x145c   :  { %2276 = vrot.lane.b32.xlu0 %v2265_v12, %s4003_s0 }
0x14c7   :  { %v2392_v37 = vpop.xlane.xlu0 %2391 }
0x14c8   :  { %3720 = vrcp.f32 %v2392_v37 }
0x14cb   :  { %v2389_v38 = vpop.xlane.xlu0 %2388 }
0x14cc   :  { %3722 = vrcp.f32 %v2389_v38 }
0x14cf   :  { %v2406_v39 = vpop.permute.xlu0 %2405 }
0x14d0   :  { %3587 = vmatprep.subr.mxu1 %v2406_v39 }
0x14d1   :  { %3588 = vmatpush3.msra.mxu1 %v2406_v39 }
0x14d2   :  { %3589 = vmatprep.subr.mxu1 %v2404_v31 }
0x14d3   :  { %3590 = vmatpush3.msra.mxu1 %v2404_v31  ;;  %v2277_v40 = vpop.permute.xlu0 %2276  ;;  %v2670_v31 = vld [vmem:[#allocation18 + $0x1b0] sm:$0xff] }
0x14d4   :  { %2282 = vst.msk [vmem:[#allocation2] sm:$0xff] %vm1097_vm3, %v2277_v40  ;;  %2702 = vmatprep.subr.mxu1 %v2677_v19  ;;  %v2627_v19 = vld [vmem:[#allocation18 + $0x58] sm:$0xff] }
0x14d5   :  { %v3721_v41 = vpop.eup %3720 }
0x14d6   :  { %v2396_v42 = vmul.f32 %v3721_v41, %v2392_v37 }
0x14d8   :  { %v2398_v44 = vsub.f32 2.0, %v2396_v42 }
0x14d9   :  { %v3723_v43 = vpop.eup %3722 }
0x14da   :  { %v2395_v45 = vmul.f32 %v3723_v43, %v2389_v38  ;;  %v2400_v46 = vmul.f32 %v3721_v41, %v2398_v44 }
0x14dc   :  { %v2397_v21 = vsub.f32 2.0, %v2395_v45  ;;  %v2402_v51 = vmul.f32 %v3717_v29, %v2400_v46  ;;  %v2661_v29 = vld [vmem:[#allocation18 + $0x168] sm:$0xff]  ;;  %v2656_v46 = vld [vmem:[#allocation18 + $0x140] sm:$0xff] }
0x14dd   :  { %v2657_v45 = vld [vmem:[#allocation18 + $0x148] sm:$0xff] }
0x14de   :  { %v2399_v49 = vmul.f32 %v3723_v43, %v2397_v21  ;;  %v2659_v21 = vld [vmem:[#allocation18 + $0x158] sm:$0xff] }
0x14e0   :  { %v2401_v50 = vmul.f32 %v3719_v35, %v2399_v49  ;;  %v2660_v35 = vld [vmem:[#allocation18 + $0x160] sm:$0xff]  ;;  %v2658_v49 = vld [vmem:[#allocation18 + $0x150] sm:$0xff] }
0x14e2   :  { %3591 = vmatprep.mubr.msk.f32.mxu1 %vm552_vm1, %v2401_v50  ;;  %v2653_v50 = vld [vmem:[#allocation18 + $0x128] sm:$0xff] }
0x14e3   :  { %3592 = vmatmul.mubr.msk.f32.vlgmr.msra.gmra.mxu1 %vm552_vm1, %v2402_v51  ;;  %v2655_v51 = vld [vmem:[#allocation18 + $0x138] sm:$0xff] }
0x14e4   :  { %2766 = vmatprep.mubr.f32.mxu1 %v4001_v56  ;;  %2703 = vmatpush1.msra.mxu1 %v2676_v14  ;;  %v2626_v14 = vld [vmem:[#allocation18 + $0x50] sm:$0xff] }
0x14e5   :  { %2704 = vmatprep.subr.mxu1 %v2673_v13  ;;  %v2623_v13 = vld [vmem:[#allocation18 + $0x38] sm:$0xff] }
0x15a3   :  { %v3593_v18 = vpop.f32.mrf.mxu1 }
0x15a4   :  { %2494 = vrot.lane.b32.xlu1 %v3593_v18, %s4002_s4  ;;  %v2636_v18 = vld [vmem:[#allocation18 + $0xa0] sm:$0xff] }
0x15a5   :  { %v2481_v16 = vpop.f32.mrf.mxu1 }
0x15a6   :  { %2492 = vrot.lane.b32.xlu0 %v2481_v16, %s4002_s4  ;;  %v2638_v16 = vld [vmem:[#allocation18 + $0xb0] sm:$0xff] }
0x1616   :  { %v2495_v15 = vpop.permute.xlu1 %2494 }
0x1617   :  { %2499 = vst.msk [vmem:[#allocation2 + $0x8] sm:$0xff] %vm1314_vm4, %v2495_v15  ;;  %v2633_v15 = vld [vmem:[#allocation18 + $0x88] sm:$0xff] }
0x1618   :  { %v2493_v2 = vpop.permute.xlu0 %2492 }
0x1619   :  { %2498 = vst.msk [vmem:[#allocation2] sm:$0xff] %vm1314_vm4, %v2493_v2  ;;  %v2635_v2 = vld [vmem:[#allocation18 + $0x98] sm:$0xff] }
0x161e   :  { %v2501_v6 = vld [vmem:[#allocation2 + $0x8] sm:$0xff] }
0x1620   :  { %v2500_v4 = vld [vmem:[#allocation2] sm:$0xff] }
0x1621   :  { %3626 = vmatprep.mubr.f32.mxu0 %v2500_v4  ;;  %v2632_v4 = vld [vmem:[#allocation18 + $0x80] sm:$0xff] }
0x1622   :  { %3627 = vmatmul.mubr.f32.vlgmr.msra.gmra.mxu0 %v2501_v6  ;;  %v2634_v6 = vld [vmem:[#allocation18 + $0x90] sm:$0xff] }
0x1623   :  { %2843 = vmatprep.mubr.f32.mxu0 %v4001_v56  ;;  %2780 = vmatpush1.msra.mxu0 %v2678_v26  ;;  %v2621_v26 = vld [vmem:[#allocation18 + $0x28] sm:$0xff] }
0x1624   :  { %2781 = vmatprep.subr.mxu0 %v2675_v27  ;;  %v2620_v27 = vld [vmem:[#allocation18 + $0x20] sm:$0xff] }
0x1625   :  { %2782 = vmatpush1.msra.mxu0 %v2674_v25  ;;  %v2617_v25 = vld [vmem:[#allocation18 + $0x8] sm:$0xff] }
0x16e2   :  { %v3628_v8 = vpop.f32.mrf.mxu0 }
0x16e3   :  { %v2580_v9 = vadd.f32 %v3628_v8, %v3162_v7  ;;  %v2631_v8 = vld [vmem:[#allocation18 + $0x78] sm:$0xff] }
0x16e4   :  { %v2574_v17 = vpop.f32.mrf.mxu0 }
0x16e5   :  { %v4495_v12 = vadd.f32 %v2580_v9, %v4328_v3  ;;  %v2575_v1 = vadd.f32 %v3162_v7, %v2574_v17  ;;  %v2672_v3 = vld [vmem:[#allocation18 + $0x1c0] sm:$0xff]  ;;  %v2629_v7 = vld [vmem:[#allocation18 + $0x68] sm:$0xff]  ;;  %v2630_v17 = vld [vmem:[#allocation18 + $0x70] sm:$0xff] }
0x16e6   :  { %2705 = vmatpush1.msra.mxu1 %v2672_v3  ;;  %v2628_v9 = vld [vmem:[#allocation18 + $0x60] sm:$0xff]  ;;  %v2622_v3 = vld [vmem:[#allocation18 + $0x30] sm:$0xff] }
0x16e7   :  { %v4498_v0 = vadd.f32 %v2575_v1, %v4331_v5  ;;  %2588 = vadd.xlane.f32.xlu1 %v4495_v12  ;;  %v2671_v5 = vld [vmem:[#allocation18 + $0x1b8] sm:$0xff]  ;;  %2706 = vmatprep.subr.mxu1 %v2669_v28  ;;  %v2625_v1 = vld [vmem:[#allocation18 + $0x48] sm:$0xff] }
0x16e8   :  { %2783 = vmatprep.subr.mxu0 %v2671_v5  ;;  %2707 = vmatpush1.msra.mxu1 %v2668_v30  ;;  %v2619_v28 = vld [vmem:[#allocation18 + $0x18] sm:$0xff]  ;;  %v2616_v5 = vld [vmem:[#allocation18] sm:$0xff]  ;;  %v2618_v30 = vld [vmem:[#allocation18 + $0x10] sm:$0xff] }
0x16e9   :  { %2586 = vadd.xlane.f32.xlu0 %v4498_v0  ;;  %2784 = vmatpush1.msra.mxu0 %v2670_v31  ;;  %v2895_v31 = vld [vmem:[#allocation20 + $0xf8] sm:$0xff] }
0x16ea   :  { %2708 = vmatprep.subr.mxu1 %v2665_v11  ;;  %2785 = vmatprep.subr.mxu0 %v2667_v32  ;;  %v2927_v11 = vld [vmem:[#allocation20 + $0x1f8] sm:$0xff] }
0x16eb   :  { %2709 = vmatpush1.msra.mxu1 %v2664_v22  ;;  %2786 = vmatpush1.msra.mxu0 %v2666_v33 }
0x16ec   :  { %2710 = vmatprep.subr.mxu1 %v2661_v29  ;;  %2787 = vmatprep.subr.mxu0 %v2663_v34 }
0x16ed   :  { %2711 = vmatpush1.msra.mxu1 %v2660_v35  ;;  %2788 = vmatpush1.msra.mxu0 %v2662_v36 }
0x16ee   :  { %2712 = vmatprep.subr.mxu1 %v2657_v45  ;;  %2789 = vmatprep.subr.mxu0 %v2659_v21  ;;  %v2894_v21 = vld [vmem:[#allocation20 + $0xf0] sm:$0xff] }
0x16ef   :  { %2713 = vmatpush1.msra.mxu1 %v2656_v46  ;;  %2790 = vmatpush1.msra.mxu0 %v2658_v49  ;;  %v2926_v46 = vld [vmem:[#allocation20 + $0x1f0] sm:$0xff] }
0x16f0   :  { %2714 = vmatprep.subr.mxu1 %v2653_v50  ;;  %2791 = vmatprep.subr.mxu0 %v2655_v51  ;;  %v2878_v50 = vld [vmem:[#allocation20 + $0x70] sm:$0xff] }
0x16f1   :  { %2715 = vmatpush1.msra.mxu1 %v2652_v52  ;;  %2792 = vmatpush1.msra.mxu0 %v2654_v53  ;;  %v2910_v51 = vld [vmem:[#allocation20 + $0x170] sm:$0xff]  ;;  %v2925_v52 = vld [vmem:[#allocation20 + $0x1e8] sm:$0xff] }
0x16f2   :  { %2716 = vmatprep.subr.mxu1 %v2649_v54  ;;  %2793 = vmatprep.subr.mxu0 %v2651_v47  ;;  %v2877_v53 = vld [vmem:[#allocation20 + $0x68] sm:$0xff]  ;;  %v2924_v47 = vld [vmem:[#allocation20 + $0x1e0] sm:$0xff] }
0x16f3   :  { %2717 = vmatpush1.msra.mxu1 %v2648_v55  ;;  %2794 = vmatpush1.msra.mxu0 %v2650_v48  ;;  %v2909_v54 = vld [vmem:[#allocation20 + $0x168] sm:$0xff]  ;;  %v2908_v55 = vld [vmem:[#allocation20 + $0x160] sm:$0xff]  ;;  %v2891_v48 = vld [vmem:[#allocation20 + $0xd8] sm:$0xff] }
0x16f4   :  { %2718 = vmatprep.subr.mxu1 %v2645_v23  ;;  %2795 = vmatprep.subr.mxu0 %v2647_v24  ;;  %v2923_v23 = vld [vmem:[#allocation20 + $0x1d8] sm:$0xff] }
0x16f5   :  { %2719 = vmatpush1.msra.mxu1 %v2644_v20  ;;  %2796 = vmatpush1.msra.mxu0 %v2646_v57  ;;  %v2875_v24 = vld [vmem:[#allocation20 + $0x58] sm:$0xff]  ;;  %v2890_v57 = vld [vmem:[#allocation20 + $0xd0] sm:$0xff] }
0x16f6   :  { %2720 = vmatprep.subr.mxu1 %v2641_v58  ;;  %2797 = vmatprep.subr.mxu0 %v2643_v59  ;;  %v2907_v20 = vld [vmem:[#allocation20 + $0x158] sm:$0xff]  ;;  %v2922_v58 = vld [vmem:[#allocation20 + $0x1d0] sm:$0xff] }
0x16f7   :  { %2721 = vmatpush1.msra.mxu1 %v2640_v60  ;;  %2798 = vmatpush1.msra.mxu0 %v2642_v61  ;;  %v2874_v59 = vld [vmem:[#allocation20 + $0x50] sm:$0xff]  ;;  %v2889_v61 = vld [vmem:[#allocation20 + $0xc8] sm:$0xff] }
0x16f8   :  { %2722 = vmatprep.subr.mxu1 %v2637_v62  ;;  %2799 = vmatprep.subr.mxu0 %v2639_v63  ;;  %v2906_v60 = vld [vmem:[#allocation20 + $0x150] sm:$0xff]  ;;  %v2921_v62 = vld [vmem:[#allocation20 + $0x1c8] sm:$0xff] }
0x16f9   :  { %2723 = vmatpush1.msra.mxu1 %v2636_v18  ;;  %2800 = vmatpush1.msra.mxu0 %v2638_v16  ;;  %v2873_v63 = vld [vmem:[#allocation20 + $0x48] sm:$0xff]  ;;  %v2888_v16 = vld [vmem:[#allocation20 + $0xc0] sm:$0xff] }
0x16fa   :  { %2724 = vmatprep.subr.mxu1 %v2633_v15  ;;  %2801 = vmatprep.subr.mxu0 %v2635_v2  ;;  %v2905_v18 = vld [vmem:[#allocation20 + $0x148] sm:$0xff]  ;;  %v2920_v15 = vld [vmem:[#allocation20 + $0x1c0] sm:$0xff] }
0x16fb   :  { %2725 = vmatpush1.msra.mxu1 %v2632_v4  ;;  %2802 = vmatpush1.msra.mxu0 %v2634_v6  ;;  %v2872_v2 = vld [vmem:[#allocation20 + $0x40] sm:$0xff]  ;;  %v2887_v6 = vld [vmem:[#allocation20 + $0xb8] sm:$0xff] }
0x16fc   :  { %2726 = vmatprep.subr.mxu1 %v2629_v7  ;;  %2803 = vmatprep.subr.mxu0 %v2631_v8  ;;  %v2904_v4 = vld [vmem:[#allocation20 + $0x140] sm:$0xff]  ;;  %v2919_v7 = vld [vmem:[#allocation20 + $0x1b8] sm:$0xff] }
0x16fd   :  { %2727 = vmatpush1.msra.mxu1 %v2628_v9  ;;  %2804 = vmatpush1.msra.mxu0 %v2630_v17  ;;  %v2871_v8 = vld [vmem:[#allocation20 + $0x38] sm:$0xff]  ;;  %v2886_v17 = vld [vmem:[#allocation20 + $0xb0] sm:$0xff] }
0x16fe   :  { %2728 = vmatprep.subr.mxu1 %v2625_v1  ;;  %2805 = vmatprep.subr.mxu0 %v2627_v19  ;;  %v2903_v9 = vld [vmem:[#allocation20 + $0x138] sm:$0xff]  ;;  %v2918_v1 = vld [vmem:[#allocation20 + $0x1b0] sm:$0xff] }
0x16ff   :  { %2729 = vmatpush1.msra.mxu1 %v2624_v10  ;;  %2806 = vmatpush1.msra.mxu0 %v2626_v14  ;;  %v2870_v19 = vld [vmem:[#allocation20 + $0x30] sm:$0xff]  ;;  %v2885_v14 = vld [vmem:[#allocation20 + $0xa8] sm:$0xff] }
0x1700   :  { %2730 = vmatprep.subr.mxu1 %v2621_v26  ;;  %2807 = vmatprep.subr.mxu0 %v2623_v13  ;;  %v2902_v10 = vld [vmem:[#allocation20 + $0x130] sm:$0xff]  ;;  %v2917_v26 = vld [vmem:[#allocation20 + $0x1a8] sm:$0xff] }
0x1701   :  { %2731 = vmatpush1.msra.mxu1 %v2620_v27  ;;  %2808 = vmatpush1.msra.mxu0 %v2622_v3  ;;  %v2869_v13 = vld [vmem:[#allocation20 + $0x28] sm:$0xff]  ;;  %v2884_v3 = vld [vmem:[#allocation20 + $0xa0] sm:$0xff] }
0x1702   :  { %2732 = vmatprep.subr.mxu1 %v2617_v25  ;;  %2809 = vmatprep.subr.mxu0 %v2619_v28  ;;  %v2901_v27 = vld [vmem:[#allocation20 + $0x128] sm:$0xff]  ;;  %v2916_v25 = vld [vmem:[#allocation20 + $0x1a0] sm:$0xff] }
0x1703   :  { %2733 = vmatpush1.msra.mxu1 %v2616_v5  ;;  %2810 = vmatpush1.msra.mxu0 %v2618_v30  ;;  %v2868_v28 = vld [vmem:[#allocation20 + $0x20] sm:$0xff]  ;;  %v2883_v30 = vld [vmem:[#allocation20 + $0x98] sm:$0xff] }
0x1704   :  { %3301 = vmatprep.subr.mxu1 %v2895_v31  ;;  %3339 = vmatprep.subr.mxu0 %v2927_v11  ;;  %v2900_v5 = vld [vmem:[#allocation20 + $0x120] sm:$0xff]  ;;  %v2915_v31 = vld [vmem:[#allocation20 + $0x198] sm:$0xff] }
0x1705   :  { %v2867_v11 = vld [vmem:[#allocation20 + $0x18] sm:$0xff] }
0x1770   :  { %v2589_v37 = vpop.xlane.xlu1 %2588 }
0x1771   :  { %v2591_v39 = vmul.f32 0.0078125, %v2589_v37  ;;  %v3163_v37 = vld [vmem:[%s4539_s6] ss:$0 sm:$0xff] }
0x1772   :  { %v2587_v38 = vpop.xlane.xlu0 %2586 }
0x1773   :  { %v2590_v40 = vmul.f32 0.0078125, %v2587_v38  ;;  %v4506_v42 = vsub.f32 %v4495_v12, %v2591_v39 }
0x1775   :  { %v4503_v41 = vsub.f32 %v4498_v0, %v2590_v40  ;;  %v2595_v44 = vmul.f32 %v4506_v42, %v4506_v42 }
0x1777   :  { %v2594_v43 = vmul.f32 %v4503_v41, %v4503_v41 }
0x1779   :  { %2596 = vadd.xlane.f32.xlu0 %v2594_v43  ;;  %v2879_v43 = vld [vmem:[#allocation20 + $0x78] sm:$0xff] }
0x177d   :  { %2598 = vadd.xlane.f32.xlu0 %v2595_v44  ;;  %v2911_v44 = vld [vmem:[#allocation20 + $0x178] sm:$0xff] }
0x1802   :  { %v2597_v32 = vpop.xlane.xlu0 %2596 }
0x1803   :  { %v2600_v22 = vmul.f32 0.0078125, %v2597_v32  ;;  %v2899_v32 = vld [vmem:[#allocation20 + $0x118] sm:$0xff] }
0x1805   :  { %v2602_v33 = vadd.f32 1e-05, %v2600_v22  ;;  %v2882_v22 = vld [vmem:[#allocation20 + $0x90] sm:$0xff] }
0x1806   :  { %v2599_v29 = vpop.xlane.xlu0 %2598 }
0x1807   :  { %3724 = vrsqrt.f32 %v2602_v33  ;;  %v2601_v34 = vmul.f32 0.0078125, %v2599_v29  ;;  %v2914_v33 = vld [vmem:[#allocation20 + $0x190] sm:$0xff] }
0x1808   :  { %v2866_v29 = vld [vmem:[#allocation20 + $0x10] sm:$0xff] }
0x1809   :  { %v2603_v35 = vadd.f32 1e-05, %v2601_v34  ;;  %v2898_v34 = vld [vmem:[#allocation20 + $0x110] sm:$0xff] }
0x180b   :  { %3726 = vrsqrt.f32 %v2603_v35  ;;  %v2881_v35 = vld [vmem:[#allocation20 + $0x88] sm:$0xff] }
0x1814   :  { %v3725_v36 = vpop.eup %3724 }
0x1815   :  { %v2606_v38 = vmul.f32 %v3725_v36, %v4503_v41  ;;  %v2893_v41 = vld [vmem:[#allocation20 + $0xe8] sm:$0xff] }
0x1816   :  { %v2913_v36 = vld [vmem:[#allocation20 + $0x188] sm:$0xff] }
0x1817   :  { %v2614_v39 = vmul.f32 %v3163_v37, %v2606_v38  ;;  %v2897_v38 = vld [vmem:[#allocation20 + $0x108] sm:$0xff] }
0x1818   :  { %v3727_v40 = vpop.eup %3726 }
0x1819   :  { %2767 = vmatmul.mubr.f32.vlgmr.msra.gmra.mxu1 %v2614_v39  ;;  %2844 = vmatmul.mubr.f32.vlgmr.msra.gmra.mxu0 %v2614_v39  ;;  %v2607_v45 = vmul.f32 %v3727_v40, %v4506_v42  ;;  %v2892_v42 = vld [vmem:[#allocation20 + $0xe0] sm:$0xff] }
0x181a   :  { %2772 = vmatprep.mubr.f32.mxu1 %v4001_v56  ;;  %2849 = vmatprep.mubr.f32.mxu0 %v4001_v56  ;;  %v2876_v56 = vld [vmem:[#allocation20 + $0x60] sm:$0xff] }
0x181b   :  { %v2615_v49 = vmul.f32 %v3163_v37, %v2607_v45  ;;  %3302 = vmatpush3.msra.mxu1 %v2879_v43  ;;  %3340 = vmatpush3.msra.mxu0 %v2911_v44  ;;  %v2865_v37 = vld [vmem:[#allocation20 + $0x8] sm:$0xff]  ;;  %v2880_v39 = vld [vmem:[#allocation20 + $0x80] sm:$0xff]  ;;  %v2682_v45 = vlaneseq }
0x181c   :  { %3303 = vmatprep.subr.mxu1 %v2894_v21  ;;  %3341 = vmatprep.subr.mxu0 %v2926_v46  ;;  %v2912_v40 = vld [vmem:[#allocation20 + $0x180] sm:$0xff] }
0x181d   :  { %2773 = vmatmul.mubr.f32.gmra.mxu1 %v2615_v49  ;;  %2850 = vmatmul.mubr.f32.gmra.mxu0 %v2615_v49  ;;  %v2864_v43 = vld [vmem:[#allocation20] sm:$0xff]  ;;  %v2683_v21 = vshrl.u32 %v2682_v45, 7 }
0x181e   :  { %3304 = vmatpush3.msra.mxu1 %v2878_v50  ;;  %3342 = vmatpush3.msra.mxu0 %v2910_v51  ;;  %v2896_v44 = vld [vmem:[#allocation20 + $0x100] sm:$0xff]  ;;  %v2680_v50 = vld [vmem:[%s4548_s15] sm:$0xf] }
0x181f   :  { %3305 = vmatprep.subr.mxu1 %v2893_v41  ;;  %3343 = vmatprep.subr.mxu0 %v2925_v52  ;;  %v2684_v46 = vsub.s32 0, %v2683_v21  ;;  %v2692_v49 = vsub.s32 2, %v2683_v21  ;;  %v2688_v51 = vsub.s32 1, %v2683_v21  ;;  %v2696_v41 = vsub.s32 3, %v2683_v21 }
0x1820   :  { %3306 = vmatpush3.msra.mxu1 %v2877_v53  ;;  %3344 = vmatpush3.msra.mxu0 %v2909_v54 }
0x1821   :  { %3307 = vmatprep.subr.mxu1 %v2892_v42  ;;  %3345 = vmatprep.subr.mxu0 %v2924_v47  ;;  %v2685_v52 = vrot.slane %v2680_v50, %v2684_v46  ;;  %v2693_v53 = vrot.slane %v2680_v50, %v2692_v49  ;;  %v2689_v54 = vrot.slane %v2680_v50, %v2688_v51 }
0x1822   :  { %3308 = vmatpush3.msra.mxu1 %v2876_v56  ;;  %3346 = vmatpush3.msra.mxu0 %v2908_v55  ;;  %v2697_v42 = vrot.slane %v2680_v50, %v2696_v41 }
0x1823   :  { %3309 = vmatprep.subr.mxu1 %v2891_v48  ;;  %3347 = vmatprep.subr.mxu0 %v2923_v23 }
0x1824   :  { %3310 = vmatpush3.msra.mxu1 %v2875_v24  ;;  %3348 = vmatpush3.msra.mxu0 %v2907_v20 }
0x1825   :  { %3311 = vmatprep.subr.mxu1 %v2890_v57  ;;  %3349 = vmatprep.subr.mxu0 %v2922_v58 }
0x1826   :  { %3312 = vmatpush3.msra.mxu1 %v2874_v59  ;;  %3350 = vmatpush3.msra.mxu0 %v2906_v60 }
0x1827   :  { %3313 = vmatprep.subr.mxu1 %v2889_v61  ;;  %3351 = vmatprep.subr.mxu0 %v2921_v62 }
0x1828   :  { %3314 = vmatpush3.msra.mxu1 %v2873_v63  ;;  %3352 = vmatpush3.msra.mxu0 %v2905_v18 }
0x1829   :  { %3315 = vmatprep.subr.mxu1 %v2888_v16  ;;  %3353 = vmatprep.subr.mxu0 %v2920_v15 }
0x182a   :  { %3316 = vmatpush3.msra.mxu1 %v2872_v2  ;;  %3354 = vmatpush3.msra.mxu0 %v2904_v4 }
0x182b   :  { %3317 = vmatprep.subr.mxu1 %v2887_v6  ;;  %3355 = vmatprep.subr.mxu0 %v2919_v7 }
0x182c   :  { %3318 = vmatpush3.msra.mxu1 %v2871_v8  ;;  %3356 = vmatpush3.msra.mxu0 %v2903_v9 }
0x182d   :  { %3319 = vmatprep.subr.mxu1 %v2886_v17  ;;  %3357 = vmatprep.subr.mxu0 %v2918_v1 }
0x182e   :  { %3320 = vmatpush3.msra.mxu1 %v2870_v19  ;;  %3358 = vmatpush3.msra.mxu0 %v2902_v10  ;;  %v3164_v10 = vld [vmem:[%s4550_s17] ss:$0 sm:$0xff]  ;;  %s3948_s17 = scalar_lea.vmem %s3095_s14, 256 }
0x182f   :  { %3321 = vmatprep.subr.mxu1 %v2885_v14  ;;  %3359 = vmatprep.subr.mxu0 %v2917_v26  ;;  %p3949_p13 = scmp.ne.s32.totalorder %s3095_s14, %s3948_s17  ;;  %p3954_p1 = scmp.lt.s32.totalorder %s3948_s17, %s3948_s17 }
0x1830   :  { %3322 = vmatpush3.msra.mxu1 %v2869_v13  ;;  %3360 = vmatpush3.msra.mxu0 %v2901_v27 }
0x1831   :  { %3323 = vmatprep.subr.mxu1 %v2884_v3  ;;  %3361 = vmatprep.subr.mxu0 %v2916_v25  ;;  %p3955_p2 = por %p3954_p1, %p3953_p0 }
0x1832   :  { %3324 = vmatpush3.msra.mxu1 %v2868_v28  ;;  %3362 = vmatpush3.msra.mxu0 %v2900_v5 }
0x1833   :  { %3325 = vmatprep.subr.mxu1 %v2883_v30  ;;  %3363 = vmatprep.subr.mxu0 %v2915_v31  ;;  %p3956_p3 = pnand %p3955_p2, %p3949_p13 }
0x1834   :  { %3326 = vmatpush3.msra.mxu1 %v2867_v11  ;;  %3364 = vmatpush3.msra.mxu0 %v2899_v32 }
0x1835   :  { %3327 = vmatprep.subr.mxu1 %v2882_v22  ;;  %3365 = vmatprep.subr.mxu0 %v2914_v33 }
0x1836   :  { %3328 = vmatpush3.msra.mxu1 %v2866_v29  ;;  %3366 = vmatpush3.msra.mxu0 %v2898_v34 }
0x1837   :  { %3329 = vmatprep.subr.mxu1 %v2881_v35  ;;  %3367 = vmatprep.subr.mxu0 %v2913_v36 }
0x1838   :  { %3330 = vmatpush3.msra.mxu1 %v2865_v37  ;;  %3368 = vmatpush3.msra.mxu0 %v2897_v38 }
0x1839   :  { %3331 = vmatprep.subr.mxu1 %v2880_v39  ;;  %3369 = vmatprep.subr.mxu0 %v2912_v40 }
0x183a   :  { %3332 = vmatpush3.msra.mxu1 %v2864_v43  ;;  %3370 = vmatpush3.msra.mxu0 %v2896_v44 }
0x18d9   :  { %v2768_v47 = vpop.f32.mrf.mxu1  ;;  %v2845_v56 = vpop.f32.mrf.mxu0 }
0x18da   :  { %v2769_v55 = vadd.f32 %v2768_v47, %v2685_v52  ;;  %v2846_v48 = vadd.f32 %v2845_v56, %v2693_v53 }
0x18db   :  { %v2770_v23 = vpop.f32.mrf.mxu1  ;;  %v2847_v24 = vpop.f32.mrf.mxu0 }
0x18dc   :  { %v2771_v20 = vadd.f32 %v2770_v23, %v2689_v54  ;;  %v2848_v57 = vadd.f32 %v2847_v24, %v2697_v42  ;;  %v2856_v62 = vmax.f32 %v2769_v55, 0.0  ;;  %v2858_v63 = vmax.f32 %v2846_v48, 0.0 }
0x18dd   :  { %v2774_v58 = vpop.f32.mrf.mxu1  ;;  %v2851_v59 = vpop.f32.mrf.mxu0 }
0x18de   :  { %v2857_v60 = vmax.f32 %v2771_v20, 0.0  ;;  %v2859_v61 = vmax.f32 %v2848_v57, 0.0  ;;  %v2775_v18 = vadd.f32 %v2774_v58, %v2685_v52  ;;  %v2852_v16 = vadd.f32 %v2851_v59, %v2693_v53 }
0x18df   :  { %v2776_v15 = vpop.f32.mrf.mxu1  ;;  %v2853_v2 = vpop.f32.mrf.mxu0 }
0x18e0   :  { %v2777_v4 = vadd.f32 %v2776_v15, %v2689_v54  ;;  %v2854_v6 = vadd.f32 %v2853_v2, %v2697_v42  ;;  %2999 = vmatprep.mubr.f32.mxu1 %v2857_v60  ;;  %3074 = vmatprep.mubr.f32.mxu0 %v2859_v61  ;;  %v2860_v9 = vmax.f32 %v2775_v18, 0.0  ;;  %v2862_v17 = vmax.f32 %v2852_v16, 0.0 }
0x18e1   :  { %3000 = vmatmul.mubr.f32.vlgmr.msra.gmra.mxu1 %v2856_v62  ;;  %3075 = vmatmul.mubr.f32.vlgmr.msra.gmra.mxu0 %v2858_v63 }
0x18e2   :  { %v2861_v7 = vmax.f32 %v2777_v4, 0.0  ;;  %v2863_v8 = vmax.f32 %v2854_v6, 0.0 }
0x18e4   :  { %3004 = vmatprep.mubr.f32.mxu1 %v2861_v7  ;;  %3079 = vmatprep.mubr.f32.mxu0 %v2863_v8 }
0x18e5   :  { %3005 = vmatmul.mubr.f32.gmra.mxu1 %v2860_v9  ;;  %3080 = vmatmul.mubr.f32.gmra.mxu0 %v2862_v17 }
0x19a1   :  { %v3333_v1 = vpop.f32.mrf.mxu1  ;;  %v3371_v19 = vpop.f32.mrf.mxu0 }
0x19a3   :  { %v3334_v14 = vpop.f32.mrf.mxu1  ;;  %v3372_v26 = vpop.f32.mrf.mxu0 }
0x19a4   :  { %v3335_v13 = vadd.f32 %v3334_v14, %v3333_v1  ;;  %v3373_v28 = vadd.f32 %v3372_v26, %v3371_v19 }
0x19a5   :  { %v3336_v27 = vpop.f32.mrf.mxu1  ;;  %v3374_v3 = vpop.f32.mrf.mxu0 }
0x19a6   :  { %v3002_v25 = vadd.f32 %v3335_v13, %v3164_v10 }
0x19a7   :  { %v3337_v5 = vpop.f32.mrf.mxu1  ;;  %v3375_v30 = vpop.f32.mrf.mxu0 }
0x19a8   :  { %v3077_v31 = vadd.f32 %v3373_v28, %v3002_v25  ;;  %v3338_v11 = vadd.f32 %v3337_v5, %v3336_v27  ;;  %v3376_v33 = vadd.f32 %v3375_v30, %v3374_v3 }
0x19aa   :  { %v3085_v32 = vadd.f32 %v3077_v31, %v4498_v0  ;;  %v3007_v22 = vadd.f32 %v3338_v11, %v3164_v10 }
0x19ac   :  { %3087 = vst [vmem:[#allocation21] sm:$0xff] %v3085_v32  ;;  %v3082_v29 = vadd.f32 %v3376_v33, %v3007_v22 }
0x19ae   :  { %v3086_v34 = vadd.f32 %v3082_v29, %v4495_v12 }
0x19b0   :  { %3088 = vst [vmem:[#allocation21 + $0x8] sm:$0xff] %v3086_v34 }
0x19b1   :  { %3959 = shalt.err (!%p3956_p3)
}
0x19b2   :  { %3100 = dma.vmem_to_hbm [thread:$0]  %s3095_s14, 256, %s4551_s18, [#allocation5], %s3984_s19, %s3984_s19, %s3985_s1  }
0x19b3   :  { %3980 = dma.done.wait [#allocation5], 256  }
0x19b4   :  { %3981 = vsyncadd [#allocation5], 4294967040 }
0x19b5   :  { %3104 = vsyncpa [#allocation4], 1 }
0x19b6   :  { %3105 = vsyncpa [#allocation7], 1 }
0x19b7   :  { %3106 = vsyncpa [#allocation10], 1 }
0x19b8   :  { %3107 = vsyncpa [#allocation13], 1 }
0x19b9   :  { %3108 = vsyncpa [#allocation16], 1 }
0x19ba   :  { %3109 = vsyncpa [#allocation19], 1 }
0x19bb   :  { %3110 = vsyncpa [#allocation5], 1 }

</bundles_post_ra>
